<compile_context>
chip_gen: v6e
topology: v6e:2x2x1
jax: 0.10.0
libtpu: 0.0.40
codegen_flags: <defaults>
</compile_context>

<pallas_src>
import functools

import jax
import jax.numpy as jnp
from jax import lax
from jax.experimental import pallas as pl
from jax.experimental.pallas import tpu as pltpu


def discriminator_kernel(obs_ref, pack_ref, w_ih_ref, w_hh_ref, wc_ref,
                         out_ref, pre_ref, *, seq_len, npeds, emb_dim, h_dim,
                         mlp_dim):
    # obs_ref:  (T*N, 2)  f32   traj_rel, time-major, pre-flattened
    # pack_ref: (3, PW)   f32   row0 = [b_emb | b_gates(512) | b_c1 | b_c2]
    #                           row1 = W_emb[0], row2 = W_emb[1]   (lane-packed)
    # w_ih_ref: (E, 4G)   f32   gate k at columns [G*k, G*k + H)
    # w_hh_ref: (H, 4G)   bf16  same padded gate layout
    # wc_ref:   (H+1, M)  f32   rows 0..H-1 = W_c1, row H = W_c2
    # out_ref:  (N, 1)    f32
    # pre_ref:  (T*N, 4G) f32   VMEM scratch (hoisted pre-activations)
    E, H, M = emb_dim, h_dim, mlp_dim
    G = w_hh_ref.shape[1] // 4            # 128-aligned per-gate lane stride
    off_bg = G
    off_bc1 = off_bg + 4 * G
    off_bc2 = ((off_bc1 + M + G - 1) // G) * G

    # ---- Hoisted, non-recurrent work (off the serial critical path) -------
    x = obs_ref[...]                                     # (T*N, 2)
    b_emb = pack_ref[0:1, 0:E]                           # (1, E)
    w_emb0 = pack_ref[1:2, 0:E]                          # (1, E)
    w_emb1 = pack_ref[2:3, 0:E]                          # (1, E)
    # K=2 "matmul" on the VPU: two broadcast mul-adds, no MXU push/pop.
    emb = x[:, 0:1] * w_emb0 + x[:, 1:2] * w_emb1 + b_emb
    emb = jnp.maximum(emb, 0.01 * emb)                   # F.leaky_relu (0.01)

    b_gates = pack_ref[0:1, off_bg:off_bg + 4 * G]       # (1, 4G)
    pre_ref[...] = (jnp.dot(emb, w_ih_ref[...],
                            preferred_element_type=jnp.float32)
                    + b_gates)                           # (T*N, 4G)

    w_hh = w_hh_ref[...]                                 # (H, 4G) bf16

    # ---- Serial LSTM recurrence -------------------------------------------
    def step(t, carry):
        h, c = carry
        row = pl.multiple_of(t * npeds, npeds)
        gates = pre_ref[pl.ds(row, npeds), :] + jnp.dot(
            h.astype(w_hh.dtype), w_hh, preferred_element_type=jnp.float32)
        # Each gate sits at a 128-aligned lane block -> slices are lane-aligned
        # with h/c; EUP only touches the live 64 lanes of each gate.
        i_g = jax.nn.sigmoid(gates[:, 0 * G:0 * G + H])
        f_g = jax.nn.sigmoid(gates[:, 1 * G:1 * G + H])
        g_g = jnp.tanh(gates[:, 2 * G:2 * G + H])
        o_g = jax.nn.sigmoid(gates[:, 3 * G:3 * G + H])
        c_new = f_g * c + i_g * g_g
        h_new = o_g * jnp.tanh(c_new)
        return h_new, c_new

    h0 = jnp.zeros((npeds, H), jnp.float32)
    c0 = jnp.zeros((npeds, H), jnp.float32)
    h_final, _ = lax.fori_loop(0, seq_len, step, (h0, c0), unroll=True)

    # ---- real_classifier: Linear -> LeakyReLU -> Linear -> LeakyReLU ------
    w_c1 = wc_ref[0:H, :]                                # (H, M)
    w_c2 = wc_ref[H:H + 1, :]                            # (1, M)
    b_c1 = pack_ref[0:1, off_bc1:off_bc1 + M]            # (1, M)
    b_c2 = pack_ref[0:1, off_bc2:off_bc2 + 1]            # (1, 1)

    z = (jnp.dot(h_final, w_c1, preferred_element_type=jnp.float32) + b_c1)
    z = jnp.maximum(z, 0.01 * z)
    # Output width is 1: do it as a lane-reduce instead of an MXU matmul.
    s = jnp.sum(z * w_c2, axis=1, keepdims=True) + b_c2
    out_ref[...] = jnp.maximum(s, 0.01 * s)              # (N, 1)


def discriminator_forward(traj, traj_rel, params):
    """traj is accepted but unused, matching the PyTorch forward."""
    del traj
    (w_emb, b_emb, w_ih, b_ih, w_hh, b_hh, w_c1, b_c1, w_c2, b_c2) = params
    T, N, _ = traj_rel.shape
    E = w_emb.shape[1]
    H = w_hh.shape[0]
    M = w_c1.shape[1]
    G = ((H + 127) // 128) * 128          # per-gate lane block (128-aligned)
    assert E <= G

    def pad_gate_cols(a):
        # (..., 4H) -> (..., 4G) with gate k placed at columns [G*k, G*k + H).
        z = jnp.zeros(a.shape[:-1] + (G - H,), a.dtype)
        return jnp.concatenate(
            [jnp.concatenate([a[..., H * k:H * (k + 1)], z], axis=-1)
             for k in range(4)], axis=-1)

    w_ih_pad = pad_gate_cols(w_ih)                        # (E, 4G)
    w_hh_pad = pad_gate_cols(w_hh).astype(jnp.bfloat16)   # (H, 4G) bf16
    b_gates_pad = pad_gate_cols(b_ih + b_hh)              # (1, 4G)  folded bias

    # Parameter pack: one DMA for every tiny tensor, 128-aligned sub-slots.
    off_bemb = 0
    off_bg = G
    off_bc1 = off_bg + 4 * G
    off_bc2 = ((off_bc1 + M + G - 1) // G) * G
    pack_w = off_bc2 + G
    pack = jnp.zeros((3, pack_w), jnp.float32)
    pack = pack.at[0, off_bemb:off_bemb + E].set(b_emb[0])
    pack = pack.at[0, off_bg:off_bg + 4 * G].set(b_gates_pad[0])
    pack = pack.at[0, off_bc1:off_bc1 + M].set(b_c1[0])
    pack = pack.at[0, off_bc2:off_bc2 + 1].set(b_c2[0])
    pack = pack.at[1, 0:E].set(w_emb[0])
    pack = pack.at[2, 0:E].set(w_emb[1])

    w_c = jnp.concatenate([w_c1, w_c2], axis=0)           # (H+1, M)
    obs2 = traj_rel.reshape(T * N, 2)                     # flatten in XLA

    kernel = functools.partial(discriminator_kernel, seq_len=T, npeds=N,
                               emb_dim=E, h_dim=H, mlp_dim=M)
    return pl.pallas_call(
        kernel,
        out_shape=jax.ShapeDtypeStruct((N, 1), jnp.float32),
        in_specs=[pl.BlockSpec(memory_space=pltpu.MemorySpace.VMEM)] * 5,
        out_specs=pl.BlockSpec(memory_space=pltpu.MemorySpace.VMEM),
        scratch_shapes=[pltpu.VMEM((T * N, 4 * G), jnp.float32)],
    )(obs2, pack, w_ih_pad, w_hh_pad, w_c)


def reference_forward(traj_rel, params):
    """Pure-JAX (f32) reference mirroring the PyTorch forward."""
    (w_emb, b_emb, w_ih, b_ih, w_hh, b_hh, w_c1, b_c1, w_c2, b_c2) = params
    T, N, _ = traj_rel.shape
    H = w_hh.shape[0]
    emb = traj_rel.reshape(-1, 2) @ w_emb + b_emb
    emb = jnp.where(emb > 0, emb, 0.01 * emb)
    emb = emb.reshape(T, N, -1)
    h = jnp.zeros((N, H), jnp.float32)
    c = jnp.zeros((N, H), jnp.float32)
    for t in range(T):
        gates = emb[t] @ w_ih + b_ih + h @ w_hh + b_hh
        i = jax.nn.sigmoid(gates[:, 0 * H:1 * H])
        f = jax.nn.sigmoid(gates[:, 1 * H:2 * H])
        g = jnp.tanh(gates[:, 2 * H:3 * H])
        o = jax.nn.sigmoid(gates[:, 3 * H:4 * H])
        c = f * c + i * g
        h = o * jnp.tanh(c)
    z = h @ w_c1 + b_c1
    z = jnp.where(z > 0, z, 0.01 * z)
    s = z @ w_c2.T + b_c2
    return jnp.where(s > 0, s, 0.01 * s)


if __name__ == "__main__":
    embedding_dim = 16
    h_dim = 64
    mlp_dim = 64
    seq_len = 8
    npeds = 8

    key = jax.random.PRNGKey(0)
    keys = jax.random.split(key, 12)

    # Deterministic param init (PyTorch-style uniform bounds; weights stored
    # transposed so the contraction dim is first).
    lin2_bound = 1.0 / jnp.sqrt(2.0)
    lstm_bound = 1.0 / jnp.sqrt(float(h_dim))
    c1_bound = 1.0 / jnp.sqrt(float(h_dim))
    c2_bound = 1.0 / jnp.sqrt(float(mlp_dim))

    # nn.Linear(2, E)
    w_emb = jax.random.uniform(keys[0], (2, embedding_dim), jnp.float32,
                               -lin2_bound, lin2_bound)
    b_emb = jax.random.uniform(keys[1], (1, embedding_dim), jnp.float32,
                               -lin2_bound, lin2_bound)
    # nn.LSTM(E, H, 1)
    w_ih = jax.random.uniform(keys[2], (embedding_dim, 4 * h_dim), jnp.float32,
                              -lstm_bound, lstm_bound)
    b_ih = jax.random.uniform(keys[3], (1, 4 * h_dim), jnp.float32,
                              -lstm_bound, lstm_bound)
    w_hh = jax.random.uniform(keys[4], (h_dim, 4 * h_dim), jnp.float32,
                              -lstm_bound, lstm_bound)
    b_hh = jax.random.uniform(keys[5], (1, 4 * h_dim), jnp.float32,
                              -lstm_bound, lstm_bound)
    # real_classifier: Linear(H, mlp_dim) -> LeakyReLU -> Linear(mlp_dim, 1) -> LeakyReLU
    w_c1 = jax.random.uniform(keys[6], (h_dim, mlp_dim), jnp.float32,
                              -c1_bound, c1_bound)
    b_c1 = jax.random.uniform(keys[7], (1, mlp_dim), jnp.float32,
                              -c1_bound, c1_bound)
    w_c2 = jax.random.uniform(keys[8], (1, mlp_dim), jnp.float32,
                              -c2_bound, c2_bound)          # PyTorch layout (out=1, in=M)
    b_c2 = jax.random.uniform(keys[9], (1, 1), jnp.float32,
                              -c2_bound, c2_bound)

    traj = jax.random.normal(keys[10], (seq_len, npeds, 2), jnp.float32)      # unused
    traj_rel = jax.random.normal(keys[11], (seq_len, npeds, 2), jnp.float32)

    params = (w_emb, b_emb, w_ih, b_ih, w_hh, b_hh, w_c1, b_c1, w_c2, b_c2)

    scores = discriminator_forward(traj, traj_rel, params)
    scores = jax.block_until_ready(scores)

    ref = reference_forward(traj_rel, params)
    assert scores.shape == (npeds, 1)
    # Tolerance loosened because the recurrent matmul uses bf16 weights/operands.
    assert jnp.allclose(scores, ref, atol=2e-2, rtol=2e-2), (scores, ref)

    print("KERNEL_OK")
</pallas_src>

<mosaic_0001>
module attributes {stable_mosaic.version = 11 : i64} {
  func.func @discriminator_kernel(%arg0: memref<64x2xf32, #tpu.memory_space<vmem>>, %arg1: memref<3x896xf32, #tpu.memory_space<vmem>>, %arg2: memref<16x512xf32, #tpu.memory_space<vmem>>, %arg3: memref<64x512xbf16, #tpu.memory_space<vmem>>, %arg4: memref<65x64xf32, #tpu.memory_space<vmem>>, %arg5: memref<8x1xf32, #tpu.memory_space<vmem>>, %arg6: memref<64x512xf32, #tpu.memory_space<vmem>>) attributes {dimension_semantics = [], scalar_prefetch = 0 : i64, scratch_operands = 1 : i64, tpu.core_type = #tpu.core_type<tc>} {
    %c0 = arith.constant 0 : index
    %c0_0 = arith.constant 0 : index
    %0 = vector.load %arg0[%c0, %c0_0] : memref<64x2xf32, #tpu.memory_space<vmem>>, vector<64x2xf32>
    %c0_1 = arith.constant 0 : index
    %c0_2 = arith.constant 0 : index
    %1 = vector.load %arg1[%c0_1, %c0_2] : memref<3x896xf32, #tpu.memory_space<vmem>>, vector<1x16xf32>
    %c1 = arith.constant 1 : index
    %c0_3 = arith.constant 0 : index
    %2 = vector.load %arg1[%c1, %c0_3] : memref<3x896xf32, #tpu.memory_space<vmem>>, vector<1x16xf32>
    %c2 = arith.constant 2 : index
    %c0_4 = arith.constant 0 : index
    %3 = vector.load %arg1[%c2, %c0_4] : memref<3x896xf32, #tpu.memory_space<vmem>>, vector<1x16xf32>
    %4 = vector.extract_strided_slice %0 {offsets = [0, 0], sizes = [64, 1], strides = [1, 1]} : vector<64x2xf32> to vector<64x1xf32>
    %5 = vector.broadcast %4 : vector<64x1xf32> to vector<64x16xf32>
    %6 = vector.broadcast %2 : vector<1x16xf32> to vector<64x16xf32>
    %7 = arith.mulf %5, %6 : vector<64x16xf32>
    %8 = vector.extract_strided_slice %0 {offsets = [0, 1], sizes = [64, 1], strides = [1, 1]} : vector<64x2xf32> to vector<64x1xf32>
    %9 = vector.broadcast %8 : vector<64x1xf32> to vector<64x16xf32>
    %10 = vector.broadcast %3 : vector<1x16xf32> to vector<64x16xf32>
    %11 = arith.mulf %9, %10 : vector<64x16xf32>
    %12 = arith.addf %7, %11 : vector<64x16xf32>
    %13 = vector.broadcast %1 : vector<1x16xf32> to vector<64x16xf32>
    %14 = arith.addf %12, %13 : vector<64x16xf32>
    %cst = arith.constant 0.00999999977 : f32
    %15 = vector.broadcast %cst : f32 to vector<64x16xf32>
    %16 = arith.mulf %15, %14 : vector<64x16xf32>
    %17 = arith.maximumf %14, %16 : vector<64x16xf32>
    %c0_5 = arith.constant 0 : index
    %c128 = arith.constant 128 : index
    %18 = vector.load %arg1[%c0_5, %c128] : memref<3x896xf32, #tpu.memory_space<vmem>>, vector<1x512xf32>
    %c0_6 = arith.constant 0 : index
    %c0_7 = arith.constant 0 : index
    %19 = vector.load %arg2[%c0_6, %c0_7] : memref<16x512xf32, #tpu.memory_space<vmem>>, vector<16x512xf32>
    %cst_8 = arith.constant dense<0.000000e+00> : vector<64x512xf32>
    %20 = tpu.matmul %17, %19, %cst_8 {dimension_numbers = #tpu.dot_dimension_numbers<[1], [0], [0], [1], [0, 0, 1, 1], [], []>} : vector<64x16xf32>, vector<16x512xf32>, vector<64x512xf32> -> vector<64x512xf32>
    %21 = vector.broadcast %18 : vector<1x512xf32> to vector<64x512xf32>
    %22 = arith.addf %20, %21 : vector<64x512xf32>
    %c0_9 = arith.constant 0 : index
    %c0_10 = arith.constant 0 : index
    %23 = vector.load %arg6[%c0_9, %c0_10] : memref<64x512xf32, #tpu.memory_space<vmem>>, vector<64x512xf32>
    tpu.vector_store %arg6[%c0_9, %c0_10], %22 {strides = array<i32>} : memref<64x512xf32, #tpu.memory_space<vmem>>, vector<64x512xf32>,
    %c0_11 = arith.constant 0 : index
    %c0_12 = arith.constant 0 : index
    %24 = vector.load %arg3[%c0_11, %c0_12] : memref<64x512xbf16, #tpu.memory_space<vmem>>, vector<64x512xbf16>
    %cst_13 = arith.constant 0.000000e+00 : f32
    %25 = vector.broadcast %cst_13 : f32 to vector<8x64xf32>
    %cst_14 = arith.constant 0.000000e+00 : f32
    %26 = vector.broadcast %cst_14 : f32 to vector<8x64xf32>
    %c0_i32 = arith.constant 0 : i32
    %c8_i32 = arith.constant 8 : i32
    %27 = arith.muli %c0_i32, %c8_i32 : i32
    %28 = tpu.assume_multiple %27, 8 : i32
    %29 = arith.index_cast %28 : i32 to index
    %c0_15 = arith.constant 0 : index
    %30 = vector.load %arg6[%29, %c0_15] : memref<64x512xf32, #tpu.memory_space<vmem>>, vector<8x512xf32>
    %31 = arith.truncf %25 : vector<8x64xf32> to vector<8x64xbf16>
    %cst_16 = arith.constant dense<0.000000e+00> : vector<8x512xf32>
    %32 = tpu.matmul %31, %24, %cst_16 {dimension_numbers = #tpu.dot_dimension_numbers<[1], [0], [0], [1], [0, 0, 1, 1], [], []>} : vector<8x64xbf16>, vector<64x512xbf16>, vector<8x512xf32> -> vector<8x512xf32>
    %33 = arith.addf %30, %32 : vector<8x512xf32>
    %34 = vector.extract_strided_slice %33 {offsets = [0, 0], sizes = [8, 64], strides = [1, 1]} : vector<8x512xf32> to vector<8x64xf32>
    %35 = arith.negf %34 : vector<8x64xf32>
    %36 = math.exp %35 : vector<8x64xf32>
    %cst_17 = arith.constant 1.000000e+00 : f32
    %37 = vector.broadcast %cst_17 : f32 to vector<8x64xf32>
    %38 = arith.addf %37, %36 : vector<8x64xf32>
    %39 = arith.divf %37, %38 : vector<8x64xf32>
    %40 = vector.extract_strided_slice %33 {offsets = [0, 128], sizes = [8, 64], strides = [1, 1]} : vector<8x512xf32> to vector<8x64xf32>
    %41 = arith.negf %40 : vector<8x64xf32>
    %42 = math.exp %41 : vector<8x64xf32>
    %cst_18 = arith.constant 1.000000e+00 : f32
    %43 = vector.broadcast %cst_18 : f32 to vector<8x64xf32>
    %44 = arith.addf %43, %42 : vector<8x64xf32>
    %45 = arith.divf %43, %44 : vector<8x64xf32>
    %46 = vector.extract_strided_slice %33 {offsets = [0, 256], sizes = [8, 64], strides = [1, 1]} : vector<8x512xf32> to vector<8x64xf32>
    %47 = math.tanh %46 : vector<8x64xf32>
    %48 = vector.extract_strided_slice %33 {offsets = [0, 384], sizes = [8, 64], strides = [1, 1]} : vector<8x512xf32> to vector<8x64xf32>
    %49 = arith.negf %48 : vector<8x64xf32>
    %50 = math.exp %49 : vector<8x64xf32>
    %cst_19 = arith.constant 1.000000e+00 : f32
    %51 = vector.broadcast %cst_19 : f32 to vector<8x64xf32>
    %52 = arith.addf %51, %50 : vector<8x64xf32>
    %53 = arith.divf %51, %52 : vector<8x64xf32>
    %54 = arith.mulf %45, %26 : vector<8x64xf32>
    %55 = arith.mulf %39, %47 : vector<8x64xf32>
    %56 = arith.addf %54, %55 : vector<8x64xf32>
    %57 = math.tanh %56 : vector<8x64xf32>
    %58 = arith.mulf %53, %57 : vector<8x64xf32>
    %c1_i32 = arith.constant 1 : i32
    %c8_i32_20 = arith.constant 8 : i32
    %59 = arith.muli %c1_i32, %c8_i32_20 : i32
    %60 = tpu.assume_multiple %59, 8 : i32
    %61 = arith.index_cast %60 : i32 to index
    %c0_21 = arith.constant 0 : index
    %62 = vector.load %arg6[%61, %c0_21] : memref<64x512xf32, #tpu.memory_space<vmem>>, vector<8x512xf32>
    %63 = arith.truncf %58 : vector<8x64xf32> to vector<8x64xbf16>
    %cst_22 = arith.constant dense<0.000000e+00> : vector<8x512xf32>
    %64 = tpu.matmul %63, %24, %cst_22 {dimension_numbers = #tpu.dot_dimension_numbers<[1], [0], [0], [1], [0, 0, 1, 1], [], []>} : vector<8x64xbf16>, vector<64x512xbf16>, vector<8x512xf32> -> vector<8x512xf32>
    %65 = arith.addf %62, %64 : vector<8x512xf32>
    %66 = vector.extract_strided_slice %65 {offsets = [0, 0], sizes = [8, 64], strides = [1, 1]} : vector<8x512xf32> to vector<8x64xf32>
    %67 = arith.negf %66 : vector<8x64xf32>
    %68 = math.exp %67 : vector<8x64xf32>
    %cst_23 = arith.constant 1.000000e+00 : f32
    %69 = vector.broadcast %cst_23 : f32 to vector<8x64xf32>
    %70 = arith.addf %69, %68 : vector<8x64xf32>
    %71 = arith.divf %69, %70 : vector<8x64xf32>
    %72 = vector.extract_strided_slice %65 {offsets = [0, 128], sizes = [8, 64], strides = [1, 1]} : vector<8x512xf32> to vector<8x64xf32>
    %73 = arith.negf %72 : vector<8x64xf32>
    %74 = math.exp %73 : vector<8x64xf32>
    %cst_24 = arith.constant 1.000000e+00 : f32
    %75 = vector.broadcast %cst_24 : f32 to vector<8x64xf32>
    %76 = arith.addf %75, %74 : vector<8x64xf32>
    %77 = arith.divf %75, %76 : vector<8x64xf32>
    %78 = vector.extract_strided_slice %65 {offsets = [0, 256], sizes = [8, 64], strides = [1, 1]} : vector<8x512xf32> to vector<8x64xf32>
    %79 = math.tanh %78 : vector<8x64xf32>
    %80 = vector.extract_strided_slice %65 {offsets = [0, 384], sizes = [8, 64], strides = [1, 1]} : vector<8x512xf32> to vector<8x64xf32>
    %81 = arith.negf %80 : vector<8x64xf32>
    %82 = math.exp %81 : vector<8x64xf32>
    %cst_25 = arith.constant 1.000000e+00 : f32
    %83 = vector.broadcast %cst_25 : f32 to vector<8x64xf32>
    %84 = arith.addf %83, %82 : vector<8x64xf32>
    %85 = arith.divf %83, %84 : vector<8x64xf32>
    %86 = arith.mulf %77, %56 : vector<8x64xf32>
    %87 = arith.mulf %71, %79 : vector<8x64xf32>
    %88 = arith.addf %86, %87 : vector<8x64xf32>
    %89 = math.tanh %88 : vector<8x64xf32>
    %90 = arith.mulf %85, %89 : vector<8x64xf32>
    %c2_i32 = arith.constant 2 : i32
    %c8_i32_26 = arith.constant 8 : i32
    %91 = arith.muli %c2_i32, %c8_i32_26 : i32
    %92 = tpu.assume_multiple %91, 8 : i32
    %93 = arith.index_cast %92 : i32 to index
    %c0_27 = arith.constant 0 : index
    %94 = vector.load %arg6[%93, %c0_27] : memref<64x512xf32, #tpu.memory_space<vmem>>, vector<8x512xf32>
    %95 = arith.truncf %90 : vector<8x64xf32> to vector<8x64xbf16>
    %cst_28 = arith.constant dense<0.000000e+00> : vector<8x512xf32>
    %96 = tpu.matmul %95, %24, %cst_28 {dimension_numbers = #tpu.dot_dimension_numbers<[1], [0], [0], [1], [0, 0, 1, 1], [], []>} : vector<8x64xbf16>, vector<64x512xbf16>, vector<8x512xf32> -> vector<8x512xf32>
    %97 = arith.addf %94, %96 : vector<8x512xf32>
    %98 = vector.extract_strided_slice %97 {offsets = [0, 0], sizes = [8, 64], strides = [1, 1]} : vector<8x512xf32> to vector<8x64xf32>
    %99 = arith.negf %98 : vector<8x64xf32>
    %100 = math.exp %99 : vector<8x64xf32>
    %cst_29 = arith.constant 1.000000e+00 : f32
    %101 = vector.broadcast %cst_29 : f32 to vector<8x64xf32>
    %102 = arith.addf %101, %100 : vector<8x64xf32>
    %103 = arith.divf %101, %102 : vector<8x64xf32>
    %104 = vector.extract_strided_slice %97 {offsets = [0, 128], sizes = [8, 64], strides = [1, 1]} : vector<8x512xf32> to vector<8x64xf32>
    %105 = arith.negf %104 : vector<8x64xf32>
    %106 = math.exp %105 : vector<8x64xf32>
    %cst_30 = arith.constant 1.000000e+00 : f32
    %107 = vector.broadcast %cst_30 : f32 to vector<8x64xf32>
    %108 = arith.addf %107, %106 : vector<8x64xf32>
    %109 = arith.divf %107, %108 : vector<8x64xf32>
    %110 = vector.extract_strided_slice %97 {offsets = [0, 256], sizes = [8, 64], strides = [1, 1]} : vector<8x512xf32> to vector<8x64xf32>
    %111 = math.tanh %110 : vector<8x64xf32>
    %112 = vector.extract_strided_slice %97 {offsets = [0, 384], sizes = [8, 64], strides = [1, 1]} : vector<8x512xf32> to vector<8x64xf32>
    %113 = arith.negf %112 : vector<8x64xf32>
    %114 = math.exp %113 : vector<8x64xf32>
    %cst_31 = arith.constant 1.000000e+00 : f32
    %115 = vector.broadcast %cst_31 : f32 to vector<8x64xf32>
    %116 = arith.addf %115, %114 : vector<8x64xf32>
    %117 = arith.divf %115, %116 : vector<8x64xf32>
    %118 = arith.mulf %109, %88 : vector<8x64xf32>
    %119 = arith.mulf %103, %111 : vector<8x64xf32>
    %120 = arith.addf %118, %119 : vector<8x64xf32>
    %121 = math.tanh %120 : vector<8x64xf32>
    %122 = arith.mulf %117, %121 : vector<8x64xf32>
    %c3_i32 = arith.constant 3 : i32
    %c8_i32_32 = arith.constant 8 : i32
    %123 = arith.muli %c3_i32, %c8_i32_32 : i32
    %124 = tpu.assume_multiple %123, 8 : i32
    %125 = arith.index_cast %124 : i32 to index
    %c0_33 = arith.constant 0 : index
    %126 = vector.load %arg6[%125, %c0_33] : memref<64x512xf32, #tpu.memory_space<vmem>>, vector<8x512xf32>
    %127 = arith.truncf %122 : vector<8x64xf32> to vector<8x64xbf16>
    %cst_34 = arith.constant dense<0.000000e+00> : vector<8x512xf32>
    %128 = tpu.matmul %127, %24, %cst_34 {dimension_numbers = #tpu.dot_dimension_numbers<[1], [0], [0], [1], [0, 0, 1, 1], [], []>} : vector<8x64xbf16>, vector<64x512xbf16>, vector<8x512xf32> -> vector<8x512xf32>
    %129 = arith.addf %126, %128 : vector<8x512xf32>
    %130 = vector.extract_strided_slice %129 {offsets = [0, 0], sizes = [8, 64], strides = [1, 1]} : vector<8x512xf32> to vector<8x64xf32>
    %131 = arith.negf %130 : vector<8x64xf32>
    %132 = math.exp %131 : vector<8x64xf32>
    %cst_35 = arith.constant 1.000000e+00 : f32
    %133 = vector.broadcast %cst_35 : f32 to vector<8x64xf32>
    %134 = arith.addf %133, %132 : vector<8x64xf32>
    %135 = arith.divf %133, %134 : vector<8x64xf32>
    %136 = vector.extract_strided_slice %129 {offsets = [0, 128], sizes = [8, 64], strides = [1, 1]} : vector<8x512xf32> to vector<8x64xf32>
    %137 = arith.negf %136 : vector<8x64xf32>
    %138 = math.exp %137 : vector<8x64xf32>
    %cst_36 = arith.constant 1.000000e+00 : f32
    %139 = vector.broadcast %cst_36 : f32 to vector<8x64xf32>
    %140 = arith.addf %139, %138 : vector<8x64xf32>
    %141 = arith.divf %139, %140 : vector<8x64xf32>
    %142 = vector.extract_strided_slice %129 {offsets = [0, 256], sizes = [8, 64], strides = [1, 1]} : vector<8x512xf32> to vector<8x64xf32>
    %143 = math.tanh %142 : vector<8x64xf32>
    %144 = vector.extract_strided_slice %129 {offsets = [0, 384], sizes = [8, 64], strides = [1, 1]} : vector<8x512xf32> to vector<8x64xf32>
    %145 = arith.negf %144 : vector<8x64xf32>
    %146 = math.exp %145 : vector<8x64xf32>
    %cst_37 = arith.constant 1.000000e+00 : f32
    %147 = vector.broadcast %cst_37 : f32 to vector<8x64xf32>
    %148 = arith.addf %147, %146 : vector<8x64xf32>
    %149 = arith.divf %147, %148 : vector<8x64xf32>
    %150 = arith.mulf %141, %120 : vector<8x64xf32>
    %151 = arith.mulf %135, %143 : vector<8x64xf32>
    %152 = arith.addf %150, %151 : vector<8x64xf32>
    %153 = math.tanh %152 : vector<8x64xf32>
    %154 = arith.mulf %149, %153 : vector<8x64xf32>
    %c4_i32 = arith.constant 4 : i32
    %c8_i32_38 = arith.constant 8 : i32
    %155 = arith.muli %c4_i32, %c8_i32_38 : i32
    %156 = tpu.assume_multiple %155, 8 : i32
    %157 = arith.index_cast %156 : i32 to index
    %c0_39 = arith.constant 0 : index
    %158 = vector.load %arg6[%157, %c0_39] : memref<64x512xf32, #tpu.memory_space<vmem>>, vector<8x512xf32>
    %159 = arith.truncf %154 : vector<8x64xf32> to vector<8x64xbf16>
    %cst_40 = arith.constant dense<0.000000e+00> : vector<8x512xf32>
    %160 = tpu.matmul %159, %24, %cst_40 {dimension_numbers = #tpu.dot_dimension_numbers<[1], [0], [0], [1], [0, 0, 1, 1], [], []>} : vector<8x64xbf16>, vector<64x512xbf16>, vector<8x512xf32> -> vector<8x512xf32>
    %161 = arith.addf %158, %160 : vector<8x512xf32>
    %162 = vector.extract_strided_slice %161 {offsets = [0, 0], sizes = [8, 64], strides = [1, 1]} : vector<8x512xf32> to vector<8x64xf32>
    %163 = arith.negf %162 : vector<8x64xf32>
    %164 = math.exp %163 : vector<8x64xf32>
    %cst_41 = arith.constant 1.000000e+00 : f32
    %165 = vector.broadcast %cst_41 : f32 to vector<8x64xf32>
    %166 = arith.addf %165, %164 : vector<8x64xf32>
    %167 = arith.divf %165, %166 : vector<8x64xf32>
    %168 = vector.extract_strided_slice %161 {offsets = [0, 128], sizes = [8, 64], strides = [1, 1]} : vector<8x512xf32> to vector<8x64xf32>
    %169 = arith.negf %168 : vector<8x64xf32>
    %170 = math.exp %169 : vector<8x64xf32>
    %cst_42 = arith.constant 1.000000e+00 : f32
    %171 = vector.broadcast %cst_42 : f32 to vector<8x64xf32>
    %172 = arith.addf %171, %170 : vector<8x64xf32>
    %173 = arith.divf %171, %172 : vector<8x64xf32>
    %174 = vector.extract_strided_slice %161 {offsets = [0, 256], sizes = [8, 64], strides = [1, 1]} : vector<8x512xf32> to vector<8x64xf32>
    %175 = math.tanh %174 : vector<8x64xf32>
    %176 = vector.extract_strided_slice %161 {offsets = [0, 384], sizes = [8, 64], strides = [1, 1]} : vector<8x512xf32> to vector<8x64xf32>
    %177 = arith.negf %176 : vector<8x64xf32>
    %178 = math.exp %177 : vector<8x64xf32>
    %cst_43 = arith.constant 1.000000e+00 : f32
    %179 = vector.broadcast %cst_43 : f32 to vector<8x64xf32>
    %180 = arith.addf %179, %178 : vector<8x64xf32>
    %181 = arith.divf %179, %180 : vector<8x64xf32>
    %182 = arith.mulf %173, %152 : vector<8x64xf32>
    %183 = arith.mulf %167, %175 : vector<8x64xf32>
    %184 = arith.addf %182, %183 : vector<8x64xf32>
    %185 = math.tanh %184 : vector<8x64xf32>
    %186 = arith.mulf %181, %185 : vector<8x64xf32>
    %c5_i32 = arith.constant 5 : i32
    %c8_i32_44 = arith.constant 8 : i32
    %187 = arith.muli %c5_i32, %c8_i32_44 : i32
    %188 = tpu.assume_multiple %187, 8 : i32
    %189 = arith.index_cast %188 : i32 to index
    %c0_45 = arith.constant 0 : index
    %190 = vector.load %arg6[%189, %c0_45] : memref<64x512xf32, #tpu.memory_space<vmem>>, vector<8x512xf32>
    %191 = arith.truncf %186 : vector<8x64xf32> to vector<8x64xbf16>
    %cst_46 = arith.constant dense<0.000000e+00> : vector<8x512xf32>
    %192 = tpu.matmul %191, %24, %cst_46 {dimension_numbers = #tpu.dot_dimension_numbers<[1], [0], [0], [1], [0, 0, 1, 1], [], []>} : vector<8x64xbf16>, vector<64x512xbf16>, vector<8x512xf32> -> vector<8x512xf32>
    %193 = arith.addf %190, %192 : vector<8x512xf32>
    %194 = vector.extract_strided_slice %193 {offsets = [0, 0], sizes = [8, 64], strides = [1, 1]} : vector<8x512xf32> to vector<8x64xf32>
    %195 = arith.negf %194 : vector<8x64xf32>
    %196 = math.exp %195 : vector<8x64xf32>
    %cst_47 = arith.constant 1.000000e+00 : f32
    %197 = vector.broadcast %cst_47 : f32 to vector<8x64xf32>
    %198 = arith.addf %197, %196 : vector<8x64xf32>
    %199 = arith.divf %197, %198 : vector<8x64xf32>
    %200 = vector.extract_strided_slice %193 {offsets = [0, 128], sizes = [8, 64], strides = [1, 1]} : vector<8x512xf32> to vector<8x64xf32>
    %201 = arith.negf %200 : vector<8x64xf32>
    %202 = math.exp %201 : vector<8x64xf32>
    %cst_48 = arith.constant 1.000000e+00 : f32
    %203 = vector.broadcast %cst_48 : f32 to vector<8x64xf32>
    %204 = arith.addf %203, %202 : vector<8x64xf32>
    %205 = arith.divf %203, %204 : vector<8x64xf32>
    %206 = vector.extract_strided_slice %193 {offsets = [0, 256], sizes = [8, 64], strides = [1, 1]} : vector<8x512xf32> to vector<8x64xf32>
    %207 = math.tanh %206 : vector<8x64xf32>
    %208 = vector.extract_strided_slice %193 {offsets = [0, 384], sizes = [8, 64], strides = [1, 1]} : vector<8x512xf32> to vector<8x64xf32>
    %209 = arith.negf %208 : vector<8x64xf32>
    %210 = math.exp %209 : vector<8x64xf32>
    %cst_49 = arith.constant 1.000000e+00 : f32
    %211 = vector.broadcast %cst_49 : f32 to vector<8x64xf32>
    %212 = arith.addf %211, %210 : vector<8x64xf32>
    %213 = arith.divf %211, %212 : vector<8x64xf32>
    %214 = arith.mulf %205, %184 : vector<8x64xf32>
    %215 = arith.mulf %199, %207 : vector<8x64xf32>
    %216 = arith.addf %214, %215 : vector<8x64xf32>
    %217 = math.tanh %216 : vector<8x64xf32>
    %218 = arith.mulf %213, %217 : vector<8x64xf32>
    %c6_i32 = arith.constant 6 : i32
    %c8_i32_50 = arith.constant 8 : i32
    %219 = arith.muli %c6_i32, %c8_i32_50 : i32
    %220 = tpu.assume_multiple %219, 8 : i32
    %221 = arith.index_cast %220 : i32 to index
    %c0_51 = arith.constant 0 : index
    %222 = vector.load %arg6[%221, %c0_51] : memref<64x512xf32, #tpu.memory_space<vmem>>, vector<8x512xf32>
    %223 = arith.truncf %218 : vector<8x64xf32> to vector<8x64xbf16>
    %cst_52 = arith.constant dense<0.000000e+00> : vector<8x512xf32>
    %224 = tpu.matmul %223, %24, %cst_52 {dimension_numbers = #tpu.dot_dimension_numbers<[1], [0], [0], [1], [0, 0, 1, 1], [], []>} : vector<8x64xbf16>, vector<64x512xbf16>, vector<8x512xf32> -> vector<8x512xf32>
    %225 = arith.addf %222, %224 : vector<8x512xf32>
    %226 = vector.extract_strided_slice %225 {offsets = [0, 0], sizes = [8, 64], strides = [1, 1]} : vector<8x512xf32> to vector<8x64xf32>
    %227 = arith.negf %226 : vector<8x64xf32>
    %228 = math.exp %227 : vector<8x64xf32>
    %cst_53 = arith.constant 1.000000e+00 : f32
    %229 = vector.broadcast %cst_53 : f32 to vector<8x64xf32>
    %230 = arith.addf %229, %228 : vector<8x64xf32>
    %231 = arith.divf %229, %230 : vector<8x64xf32>
    %232 = vector.extract_strided_slice %225 {offsets = [0, 128], sizes = [8, 64], strides = [1, 1]} : vector<8x512xf32> to vector<8x64xf32>
    %233 = arith.negf %232 : vector<8x64xf32>
    %234 = math.exp %233 : vector<8x64xf32>
    %cst_54 = arith.constant 1.000000e+00 : f32
    %235 = vector.broadcast %cst_54 : f32 to vector<8x64xf32>
    %236 = arith.addf %235, %234 : vector<8x64xf32>
    %237 = arith.divf %235, %236 : vector<8x64xf32>
    %238 = vector.extract_strided_slice %225 {offsets = [0, 256], sizes = [8, 64], strides = [1, 1]} : vector<8x512xf32> to vector<8x64xf32>
    %239 = math.tanh %238 : vector<8x64xf32>
    %240 = vector.extract_strided_slice %225 {offsets = [0, 384], sizes = [8, 64], strides = [1, 1]} : vector<8x512xf32> to vector<8x64xf32>
    %241 = arith.negf %240 : vector<8x64xf32>
    %242 = math.exp %241 : vector<8x64xf32>
    %cst_55 = arith.constant 1.000000e+00 : f32
    %243 = vector.broadcast %cst_55 : f32 to vector<8x64xf32>
    %244 = arith.addf %243, %242 : vector<8x64xf32>
    %245 = arith.divf %243, %244 : vector<8x64xf32>
    %246 = arith.mulf %237, %216 : vector<8x64xf32>
    %247 = arith.mulf %231, %239 : vector<8x64xf32>
    %248 = arith.addf %246, %247 : vector<8x64xf32>
    %249 = math.tanh %248 : vector<8x64xf32>
    %250 = arith.mulf %245, %249 : vector<8x64xf32>
    %c7_i32 = arith.constant 7 : i32
    %c8_i32_56 = arith.constant 8 : i32
    %251 = arith.muli %c7_i32, %c8_i32_56 : i32
    %252 = tpu.assume_multiple %251, 8 : i32
    %253 = arith.index_cast %252 : i32 to index
    %c0_57 = arith.constant 0 : index
    %254 = vector.load %arg6[%253, %c0_57] : memref<64x512xf32, #tpu.memory_space<vmem>>, vector<8x512xf32>
    %255 = arith.truncf %250 : vector<8x64xf32> to vector<8x64xbf16>
    %cst_58 = arith.constant dense<0.000000e+00> : vector<8x512xf32>
    %256 = tpu.matmul %255, %24, %cst_58 {dimension_numbers = #tpu.dot_dimension_numbers<[1], [0], [0], [1], [0, 0, 1, 1], [], []>} : vector<8x64xbf16>, vector<64x512xbf16>, vector<8x512xf32> -> vector<8x512xf32>
    %257 = arith.addf %254, %256 : vector<8x512xf32>
    %258 = vector.extract_strided_slice %257 {offsets = [0, 0], sizes = [8, 64], strides = [1, 1]} : vector<8x512xf32> to vector<8x64xf32>
    %259 = arith.negf %258 : vector<8x64xf32>
    %260 = math.exp %259 : vector<8x64xf32>
    %cst_59 = arith.constant 1.000000e+00 : f32
    %261 = vector.broadcast %cst_59 : f32 to vector<8x64xf32>
    %262 = arith.addf %261, %260 : vector<8x64xf32>
    %263 = arith.divf %261, %262 : vector<8x64xf32>
    %264 = vector.extract_strided_slice %257 {offsets = [0, 128], sizes = [8, 64], strides = [1, 1]} : vector<8x512xf32> to vector<8x64xf32>
    %265 = arith.negf %264 : vector<8x64xf32>
    %266 = math.exp %265 : vector<8x64xf32>
    %cst_60 = arith.constant 1.000000e+00 : f32
    %267 = vector.broadcast %cst_60 : f32 to vector<8x64xf32>
    %268 = arith.addf %267, %266 : vector<8x64xf32>
    %269 = arith.divf %267, %268 : vector<8x64xf32>
    %270 = vector.extract_strided_slice %257 {offsets = [0, 256], sizes = [8, 64], strides = [1, 1]} : vector<8x512xf32> to vector<8x64xf32>
    %271 = math.tanh %270 : vector<8x64xf32>
    %272 = vector.extract_strided_slice %257 {offsets = [0, 384], sizes = [8, 64], strides = [1, 1]} : vector<8x512xf32> to vector<8x64xf32>
    %273 = arith.negf %272 : vector<8x64xf32>
    %274 = math.exp %273 : vector<8x64xf32>
    %cst_61 = arith.constant 1.000000e+00 : f32
    %275 = vector.broadcast %cst_61 : f32 to vector<8x64xf32>
    %276 = arith.addf %275, %274 : vector<8x64xf32>
    %277 = arith.divf %275, %276 : vector<8x64xf32>
    %278 = arith.mulf %269, %248 : vector<8x64xf32>
    %279 = arith.mulf %263, %271 : vector<8x64xf32>
    %280 = arith.addf %278, %279 : vector<8x64xf32>
    %281 = math.tanh %280 : vector<8x64xf32>
    %282 = arith.mulf %277, %281 : vector<8x64xf32>
    %c8_i32_62 = arith.constant 8 : i32
    %c0_63 = arith.constant 0 : index
    %c0_64 = arith.constant 0 : index
    %283 = vector.load %arg4[%c0_63, %c0_64] : memref<65x64xf32, #tpu.memory_space<vmem>>, vector<64x64xf32>
    %c64 = arith.constant 64 : index
    %c0_65 = arith.constant 0 : index
    %284 = vector.load %arg4[%c64, %c0_65] : memref<65x64xf32, #tpu.memory_space<vmem>>, vector<1x64xf32>
    %c0_66 = arith.constant 0 : index
    %c640 = arith.constant 640 : index
    %285 = vector.load %arg1[%c0_66, %c640] : memref<3x896xf32, #tpu.memory_space<vmem>>, vector<1x64xf32>
    %c0_67 = arith.constant 0 : index
    %c768 = arith.constant 768 : index
    %286 = vector.load %arg1[%c0_67, %c768] : memref<3x896xf32, #tpu.memory_space<vmem>>, vector<1x1xf32>
    %cst_68 = arith.constant dense<0.000000e+00> : vector<8x64xf32>
    %287 = tpu.matmul %282, %283, %cst_68 {dimension_numbers = #tpu.dot_dimension_numbers<[1], [0], [0], [1], [0, 0, 1, 1], [], []>} : vector<8x64xf32>, vector<64x64xf32>, vector<8x64xf32> -> vector<8x64xf32>
    %288 = vector.broadcast %285 : vector<1x64xf32> to vector<8x64xf32>
    %289 = arith.addf %287, %288 : vector<8x64xf32>
    %cst_69 = arith.constant 0.00999999977 : f32
    %290 = vector.broadcast %cst_69 : f32 to vector<8x64xf32>
    %291 = arith.mulf %290, %289 : vector<8x64xf32>
    %292 = arith.maximumf %289, %291 : vector<8x64xf32>
    %293 = vector.broadcast %284 : vector<1x64xf32> to vector<8x64xf32>
    %294 = arith.mulf %292, %293 : vector<8x64xf32>
    %cst_70 = arith.constant dense<0.000000e+00> : vector<8xf32>
    %295 = vector.multi_reduction <add>, %294, %cst_70 [1] : vector<8x64xf32> to vector<8xf32>
    %296 = vector.shape_cast %295 : vector<8xf32> to vector<8x1xf32>
    %297 = vector.broadcast %286 : vector<1x1xf32> to vector<8x1xf32>
    %298 = arith.addf %296, %297 : vector<8x1xf32>
    %cst_71 = arith.constant 0.00999999977 : f32
    %299 = vector.broadcast %cst_71 : f32 to vector<8x1xf32>
    %300 = arith.mulf %299, %298 : vector<8x1xf32>
    %301 = arith.maximumf %298, %300 : vector<8x1xf32>
    %c0_72 = arith.constant 0 : index
    %c0_73 = arith.constant 0 : index
    %302 = vector.load %arg5[%c0_72, %c0_73] : memref<8x1xf32, #tpu.memory_space<vmem>>, vector<8x1xf32>
    tpu.vector_store %arg5[%c0_72, %c0_73], %301 {strides = array<i32>} : memref<8x1xf32, #tpu.memory_space<vmem>>, vector<8x1xf32>,
    return
  }
}

</mosaic_0001>

<bundles_post_ra>
// kernel: tpu_custom_call.1
= control target key start
LH: loop header
LB: loop body
LE: loop exit
PB: predicated region body
PF: predicated region fallthrough
CT: control target
= control target key end

     0   :  { %10 = vsyncpa [#allocation4], 0  ;;  %s2545_s0 = inlined_call_operand.vmem [shape: f32[64,2], index: 0, kind: input, shape index: {}]   ;;  %s2546_s1 = inlined_call_operand.hbm [shape: f32[3,896], index: 1, kind: input, shape index: {}]   ;;  %s2547_s2 = inlined_call_operand.hbm [shape: f32[16,512], index: 2, kind: input, shape index: {}]   ;;  %s2548_s3 = inlined_call_operand.vmem [shape: bf16[64,512], index: 3, kind: input, shape index: {}]   ;;  %s2549_s4 = inlined_call_operand.vmem [shape: f32[65,64], index: 4, kind: input, shape index: {}]   ;;  %s2550_s5 = inlined_call_operand.vmem [shape: f32[8,1], index: 5, kind: output, shape index: {}]  }
   0x1   :  { %11 = vsyncpa [#allocation6], 0  ;;  %s2013_s18 = smov [#allocation3]   ;;  %s2014_s20 = smov [#allocation5]  }
   0x2   :  { %s20_s19 = sshll.u32 %s2013_s18, 4  ;;  %s29_s21 = sshll.u32 %s2014_s20, 4  ;;  %s21_s19 = int_to_ptr.vmem [resolvable:$true] %s20_s19  ;;  %s30_s21 = int_to_ptr.vmem [resolvable:$true] %s29_s21 }
   0x3   :  { %s1977_s22 = scalar_lea.vmem %s21_s19, 448  ;;  %p1982_p1 = scmp.lt.s32.totalorder %s21_s19, %s21_s19 }
   0x4   :  { %p1978_p0 = scmp.ne.s32.totalorder %s21_s19, %s1977_s22  ;;  %p1983_p2 = scmp.lt.s32.totalorder %s1977_s22, %s1977_s22 }
   0x6   :  { %p1984_p3 = por %p1983_p2, %p1982_p1 }
   0x8   :  { %p1985_p4 = pnand %p1984_p3, %p1978_p0 }
   0xa   :  { %1988 = shalt.err (!%p1985_p4)
}
   0xb   :  { %23 = dma.hbm_to_vmem [thread:$0]  %s2546_s1, 448, %s21_s19, [#allocation4]  }
   0xc   :  { %s1997_s25 = scalar_lea.vmem %s30_s21, 1024  ;;  %p2002_p6 = scmp.lt.s32.totalorder %s30_s21, %s30_s21 }
   0xd   :  { %p1998_p5 = scmp.ne.s32.totalorder %s30_s21, %s1997_s25  ;;  %p2003_p7 = scmp.lt.s32.totalorder %s1997_s25, %s1997_s25 }
   0xf   :  { %p2004_p8 = por %p2003_p7, %p2002_p6 }
  0x11   :  { %p2005_p9 = pnand %p2004_p8, %p1998_p5 }
  0x13   :  { %2008 = shalt.err (!%p2005_p9)
}
  0x14   :  { %s2015_s26 = smov 512   ;;  %s2016_s27 = smov 32  }
  0x15   :  { %35 = dma.hbm_to_vmem [thread:$0]  %s2547_s2, 1024, %s30_s21, [#allocation6], %s2015_s26, %s2015_s26, %s2016_s27  }
  0x16   :  { %2009 = dma.done.wait [#allocation4], 448  }
  0x17   :  { %2010 = vsyncadd [#allocation4], 4294966848 }
  0x18   :  { %2011 = dma.done.wait [#allocation6], 1024  }
  0x19   :  { %2012 = vsyncadd [#allocation6], 4294966272  ;;  %v2553_v0 = vmov 0   ;;  %v48_v1 = vld [vmem:[%s2545_s0 + $0x8] sm:$0xff]  ;;  %v47_v2 = vld [vmem:[%s2545_s0] sm:$0xff]  ;;  %v2018_v3 = vmov 1  }
  0x1a   :  { %1807 = vset.pattern.permute.xlu1 %v2553_v0  ;;  %1805 = vset.pattern.permute.xlu0 %v2553_v0  ;;  %v49_v4 = vld [vmem:[%s2545_s0 + $0x10] sm:$0xff]  ;;  %v197_v5 = vld [vmem:[#allocation5 + $0x28] sm:$0xff]  ;;  %v196_v6 = vld [vmem:[#allocation5 + $0x20] sm:$0xff]  ;;  %v2551_v10 = vmov 0.0   ;;  %vm221_vm0 = vcmask 130048   ;;  %vm607_vm1 = vcmask 523264  }
  0x1b   :  { %65 = vperm.xlu1 %1807, %v48_v1   ;;  %60 = vperm.xlu0 %1805, %v47_v2   ;;  %v193_v7 = vld [vmem:[#allocation5 + $0x8] sm:$0xff]  ;;  %v192_v8 = vld [vmem:[#allocation5] sm:$0xff]  ;;  %v199_v14 = vld [vmem:[#allocation5 + $0x38] sm:$0xff]  ;;  %vm2020_vm2 = vmmov 0   ;;  %vm1673_vm3 = vcmask 7168  }
  0x1c   :  { %274 = vmatprep.subr.mxu0 %v197_v5  ;;  %1793 = vmatprep.subr.mxu1 %v197_v5  ;;  %v54_v9 = vld [vmem:[%s2545_s0 + $0x38] sm:$0xff]  ;;  %v51_v12 = vld [vmem:[%s2545_s0 + $0x20] sm:$0xff]  ;;  %v52_v15 = vld [vmem:[%s2545_s0 + $0x28] sm:$0xff] }
  0x1d   :  { %275 = vmatpush1.msra.mxu0 %v196_v6  ;;  %1795 = vmatpush1.msra.mxu1 %v196_v6  ;;  %v50_v11 = vld [vmem:[%s2545_s0 + $0x18] sm:$0xff]  ;;  %v2083_v13 = vld [vmem:[%s2548_s3 + $0x64] ss:$16 sps:$4 sm:$0xff]   ;;  %v2092_v19 = vld [vmem:[#allocation3 + $0x1] ss:$0 sm:$0xff] }
  0x1e   :  { %276 = vmatprep.subr.mxu0 %v193_v7  ;;  %310 = vmatprep.mubr.f32.mxu0 %v2551_v10  ;;  %v53_v16 = vld [vmem:[%s2545_s0 + $0x30] sm:$0xff]  ;;  %v2094_v20 = vld [vmem:[#allocation3 + $0x2] ss:$0 sm:$0xff]  ;;  %v2100_v27 = vld [vmem:[#allocation3] ss:$0 sm:$0xff] }
  0x1f   :  { %1808 = vset.pattern.permute.xlu1 %v2018_v3  ;;  %1806 = vset.pattern.permute.xlu0 %v2018_v3  ;;  %v2109_v39 = vld [vmem:[%s2548_s3 + $0x60] ss:$16 sps:$4 sm:$0xff]   ;;  %v2115_v44 = vld [vmem:[%s2548_s3 + $0x44] ss:$16 sps:$4 sm:$0xff]  }
  0x20   :  { %115 = vperm.xlu1 %1808, %v48_v1   ;;  %111 = vperm.xlu0 %1806, %v47_v2   ;;  %v2125_v49 = vld [vmem:[%s2548_s3 + $0x40] ss:$16 sps:$4 sm:$0xff]   ;;  %v2134_v54 = vld [vmem:[%s2548_s3 + $0x24] ss:$16 sps:$4 sm:$0xff]  }
  0x21   :  { %277 = vmatpush1.msra.mxu0 %v192_v8  ;;  %1794 = vmatprep.subr.mxu1 %v193_v7  ;;  %v198_v3 = vld [vmem:[#allocation5 + $0x30] sm:$0xff]  ;;  %v195_v5 = vld [vmem:[#allocation5 + $0x18] sm:$0xff] }
  0x22   :  { %352 = vmatprep.mubr.f32.mxu1 %v2551_v10  ;;  %1796 = vmatpush1.msra.mxu1 %v192_v8  ;;  %v2160_v6 = vld [vmem:[%s2548_s3 + $0x4] ss:$16 sps:$4 sm:$0xff]  }
  0x23   :  { %619 = vmatprep.subr.bf16.mxu0 %v2083_v13  ;;  %387 = vmatprep.subr.mxu1 %v199_v14 }
  0x24   :  { %1809 = vset.pattern.permute.xlu1 %v2553_v0  ;;  %119 = vperm.xlu0 %1806, %v49_v4  }
  0x25   :  { %70 = vperm.xlu1 %1809, %v49_v4   ;;  %v2153_v4 = vld [vmem:[%s2548_s3 + $0x20] ss:$16 sps:$4 sm:$0xff]  }
  0x28   :  { %139 = vperm.xlu0 %1806, %v54_v9  }
  0x29   :  { %95 = vperm.xlu1 %1809, %v54_v9  }
  0x2c   :  { %123 = vperm.xlu0 %1806, %v50_v11  }
  0x2d   :  { %75 = vperm.xlu1 %1809, %v50_v11   ;;  %v194_v11 = vld [vmem:[#allocation5 + $0x10] sm:$0xff] }
  0x30   :  { %127 = vperm.xlu0 %1806, %v51_v12  }
  0x31   :  { %80 = vperm.xlu1 %1809, %v51_v12  }
  0x34   :  { %131 = vperm.xlu0 %1806, %v52_v15  }
  0x35   :  { %85 = vperm.xlu1 %1809, %v52_v15   ;;  %v2170_v15 = vld [vmem:[%s2548_s3 + $0x6c] ss:$16 sps:$4 sm:$0xff]  }
  0x38   :  { %135 = vperm.xlu0 %1806, %v53_v16  }
  0x39   :  { %90 = vperm.xlu1 %1809, %v53_v16  }
  0x96   :  { %v66_v17 = vpop.permute.xlu1 %65  ;;  %v61_v18 = vpop.permute.xlu0 %60 }
  0x97   :  { %v103_v23 = vmul.f32 %v2092_v19, %v66_v17  ;;  %v102_v24 = vmul.f32 %v2092_v19, %v61_v18 }
  0x9b   :  { %v116_v21 = vpop.permute.xlu1 %115  ;;  %v112_v22 = vpop.permute.xlu0 %111 }
  0x9c   :  { %v147_v25 = vmul.f32 %v2094_v20, %v116_v21  ;;  %v146_v26 = vmul.f32 %v2094_v20, %v112_v22  ;;  %v2178_v21 = vld [vmem:[%s2548_s3 + $0x68] ss:$16 sps:$4 sm:$0xff]   ;;  %v2184_v22 = vld [vmem:[%s2548_s3] ss:$16 sps:$4 sm:$0xff]  }
  0x9e   :  { %v155_v28 = vadd.f32 %v147_v25, %v103_v23  ;;  %v154_v29 = vadd.f32 %v146_v26, %v102_v24  ;;  %v2189_v23 = vld [vmem:[%s2548_s3 + $0x4c] ss:$16 sps:$4 sm:$0xff]  }
  0x9f   :  { %v120_v30 = vpop.permute.xlu0 %119 }
  0xa0   :  { %v167_v31 = vadd.f32 %v2100_v27, %v155_v28  ;;  %v166_v32 = vadd.f32 %v2100_v27, %v154_v29  ;;  %v148_v33 = vmul.f32 %v2094_v20, %v120_v30  ;;  %v71_v34 = vpop.permute.xlu1 %70 }
  0xa1   :  { %v104_v35 = vmul.f32 %v2092_v19, %v71_v34 }
  0xa2   :  { %v174_v36 = vmul.f32 0.01, %v166_v32  ;;  %v175_v40 = vmul.f32 0.01, %v167_v31 }
  0xa3   :  { %v156_v37 = vadd.f32 %v148_v33, %v104_v35  ;;  %v140_v38 = vpop.permute.xlu0 %139  ;;  %v2203_v33 = vld [vmem:[%s2548_s3 + $0x48] ss:$16 sps:$4 sm:$0xff]  }
  0xa4   :  { %v182_v41 = vmax.f32 %v166_v32, %v174_v36  ;;  %v153_v42 = vmul.f32 %v2094_v20, %v140_v38  ;;  %v96_v43 = vpop.permute.xlu1 %95  ;;  %v2127_v50 = vmax.f32 %v167_v31, %v175_v40  ;;  %v2229_v38 = vld [vmem:[%s2548_s3 + $0xc] ss:$16 sps:$4 sm:$0xff]  }
  0xa5   :  { %v168_v45 = vadd.f32 %v2100_v27, %v156_v37  ;;  %v109_v46 = vmul.f32 %v2092_v19, %v96_v43  ;;  %v2222_v37 = vld [vmem:[%s2548_s3 + $0x28] ss:$16 sps:$4 sm:$0xff]  }
  0xa6   :  { %1691 = vmatmul.mubr.msk.f32.vlgmr.msra.gmra.mxu0 %vm221_vm0, %v182_v41 }
  0xa7   :  { %v161_v47 = vadd.f32 %v153_v42, %v109_v46  ;;  %620 = vmatpush1.bf16.msra.mxu0 %v2109_v39  ;;  %v124_v48 = vpop.permute.xlu0 %123  ;;  %316 = vmatprep.mubr.f32.mxu0 %v2551_v10  ;;  %v176_v51 = vmul.f32 0.01, %v168_v45  ;;  %v201_v42 = vlaneseq  ;;  %v191_v46 = vld [vmem:[#allocation3 + $0x4] ss:$4 sm:$0xf] }
  0xa8   :  { %v149_v52 = vmul.f32 %v2094_v20, %v124_v48  ;;  %v76_v53 = vpop.permute.xlu1 %75  ;;  %621 = vmatprep.subr.bf16.mxu0 %v2115_v44 }
  0xa9   :  { %v173_v55 = vadd.f32 %v2100_v27, %v161_v47  ;;  %v105_v56 = vmul.f32 %v2092_v19, %v76_v53  ;;  %v2142_v60 = vmax.f32 %v168_v45, %v176_v51  ;;  %v202_v43 = vshrl.u32 %v201_v42, 7 }
  0xaa   :  { %1692 = vmatmul.mubr.msk.f32.gmra.mxu0 %vm221_vm0, %v2127_v50 }
  0xab   :  { %v181_v57 = vmul.f32 0.01, %v173_v55  ;;  %v157_v58 = vadd.f32 %v149_v52, %v105_v56  ;;  %v128_v59 = vpop.permute.xlu0 %127  ;;  %322 = vmatprep.mubr.f32.mxu0 %v2551_v10  ;;  %622 = vmatpush1.bf16.msra.mxu0 %v2125_v49  ;;  %v203_v45 = vsub.s32 0, %v202_v43  ;;  %v207_v48 = vsub.s32 1, %v202_v43 }
  0xac   :  { %v150_v61 = vmul.f32 %v2094_v20, %v128_v59  ;;  %v81_v62 = vpop.permute.xlu1 %80  ;;  %623 = vmatprep.subr.bf16.mxu0 %v2134_v54 }
  0xad   :  { %v2146_v63 = vmax.f32 %v173_v55, %v181_v57  ;;  %v169_v1 = vadd.f32 %v2100_v27, %v157_v58  ;;  %v106_v2 = vmul.f32 %v2092_v19, %v81_v62  ;;  %v204_v51 = vrot.slane %v191_v46, %v203_v45 }
  0xae   :  { %1693 = vmatmul.mubr.msk.f32.gmra.mxu0 %vm221_vm0, %v2142_v60  ;;  %v208_v53 = vrot.slane %v191_v46, %v207_v48 }
  0xaf   :  { %v177_v7 = vmul.f32 0.01, %v169_v1  ;;  %v158_v8 = vadd.f32 %v150_v61, %v106_v2  ;;  %1698 = vmatmul.mubr.msk.f32.vlgmr.msra.gmra.mxu1 %vm221_vm0, %v2146_v63  ;;  %v132_v9 = vpop.permute.xlu0 %131  ;;  %328 = vmatprep.mubr.f32.mxu0 %v2551_v10 }
  0xb0   :  { %v151_v12 = vmul.f32 %v2094_v20, %v132_v9  ;;  %v86_v14 = vpop.permute.xlu1 %85  ;;  %388 = vmatpush1.msra.mxu1 %v198_v3  ;;  %423 = vmatprep.mubr.f32.mxu1 %v2551_v10  ;;  %v211_v3 = vsub.s32 2, %v202_v43  ;;  %v215_v9 = vsub.s32 3, %v202_v43 }
  0xb1   :  { %v185_v16 = vmax.f32 %v169_v1, %v177_v7  ;;  %v170_v17 = vadd.f32 %v2100_v27, %v158_v8  ;;  %v107_v18 = vmul.f32 %v2092_v19, %v86_v14  ;;  %389 = vmatprep.subr.mxu1 %v195_v5  ;;  %624 = vmatpush1.bf16.msra.mxu0 %v2153_v4 }
  0xb2   :  { %390 = vmatpush1.msra.mxu1 %v194_v11  ;;  %625 = vmatprep.subr.bf16.mxu0 %v2160_v6  ;;  %v212_v14 = vrot.slane %v191_v46, %v211_v3 }
  0xb3   :  { %v178_v24 = vmul.f32 0.01, %v170_v17  ;;  %v159_v25 = vadd.f32 %v151_v12, %v107_v18  ;;  %1694 = vmatmul.mubr.msk.f32.gmra.mxu0 %vm221_vm0, %v185_v16  ;;  %1699 = vmatmul.mubr.msk.f32.vlgmr.msra.gmra.mxu1 %vm221_vm0, %v182_v41  ;;  %v136_v26 = vpop.permute.xlu0 %135  ;;  %v2240_v41 = vld [vmem:[%s2548_s3 + $0x8] ss:$16 sps:$4 sm:$0xff]  }
  0xb4   :  { %v152_v28 = vmul.f32 %v2094_v20, %v136_v26  ;;  %v91_v29 = vpop.permute.xlu1 %90  ;;  %660 = vmatprep.subr.bf16.mxu1 %v2170_v15  ;;  %334 = vmatprep.mubr.f32.mxu0 %v2551_v10  ;;  %v2210_v20 = vld [vmem:[%s2548_s3 + $0x2c] ss:$16 sps:$4 sm:$0xff]  }
  0xb5   :  { %v186_v30 = vmax.f32 %v170_v17, %v178_v24  ;;  %v171_v31 = vadd.f32 %v2100_v27, %v159_v25  ;;  %v108_v32 = vmul.f32 %v2092_v19, %v91_v29  ;;  %661 = vmatpush1.bf16.msra.mxu1 %v2178_v21  ;;  %429 = vmatprep.mubr.f32.mxu1 %v2551_v10 }
  0xb6   :  { %626 = vmatpush1.bf16.msra.mxu0 %v2184_v22  ;;  %662 = vmatprep.subr.bf16.mxu1 %v2189_v23  ;;  %v216_v24 = vrot.slane %v191_v46, %v215_v9 }
  0xb7   :  { %v179_v34 = vmul.f32 0.01, %v171_v31  ;;  %v160_v19 = vadd.f32 %v152_v28, %v108_v32  ;;  %1695 = vmatmul.mubr.msk.f32.gmra.mxu0 %vm221_vm0, %v186_v30  ;;  %1700 = vmatmul.mubr.msk.f32.gmra.mxu1 %vm221_vm0, %v2127_v50 }
  0xb8   :  { %340 = vmatprep.mubr.f32.mxu0 %v2551_v10  ;;  %435 = vmatprep.mubr.f32.mxu1 %v2551_v10 }
  0xb9   :  { %v187_v35 = vmax.f32 %v171_v31, %v179_v34  ;;  %v172_v36 = vadd.f32 %v2100_v27, %v160_v19  ;;  %663 = vmatpush1.bf16.msra.mxu1 %v2203_v33  ;;  %740 = vmatprep.subr.bf16.mxu0 %v2083_v13 }
  0xba   :  { %664 = vmatprep.subr.bf16.mxu1 %v2210_v20 }
  0xbb   :  { %v180_v40 = vmul.f32 0.01, %v172_v36  ;;  %1696 = vmatmul.mubr.msk.f32.gmra.mxu0 %vm221_vm0, %v187_v35  ;;  %1701 = vmatmul.mubr.msk.f32.gmra.mxu1 %vm221_vm0, %v2142_v60 }
  0xbc   :  { %346 = vmatprep.mubr.f32.mxu0 %v2551_v10  ;;  %441 = vmatprep.mubr.f32.mxu1 %v2551_v10 }
  0xbd   :  { %v188_v27 = vmax.f32 %v172_v36, %v180_v40  ;;  %665 = vmatpush1.bf16.msra.mxu1 %v2222_v37 }
  0xbe   :  { %666 = vmatprep.subr.bf16.mxu1 %v2229_v38 }
  0xbf   :  { %1697 = vmatmul.mubr.msk.f32.gmra.mxu0 %vm221_vm0, %v188_v27  ;;  %1702 = vmatmul.mubr.msk.f32.gmra.mxu1 %vm221_vm0, %v185_v16 }
  0xc0   :  { %447 = vmatprep.mubr.f32.mxu1 %v2551_v10  ;;  %643 = vmatprep.mubr.bf16.mxu0 %v2553_v0 }
  0xc1   :  { %667 = vmatpush1.bf16.msra.mxu1 %v2240_v41 }
  0xc2   :  { %781 = vmatprep.subr.bf16.mxu1 %v2170_v15 }
  0xc3   :  { %1703 = vmatmul.mubr.msk.f32.gmra.mxu1 %vm221_vm0, %v186_v30  ;;  %644 = vmatmul.mubr.bf16.vlgmr.msra.gmra.mxu0 %v2553_v0 }
  0xc4   :  { %453 = vmatprep.mubr.f32.mxu1 %v2551_v10  ;;  %741 = vmatpush1.bf16.msra.mxu0 %v2109_v39 }
  0xc5   :  { %742 = vmatprep.subr.bf16.mxu0 %v2115_v44  ;;  %764 = vmatprep.mubr.bf16.mxu0 %v2553_v0 }
  0xc7   :  { %1704 = vmatmul.mubr.msk.f32.gmra.mxu1 %vm221_vm0, %v187_v35 }
  0xc8   :  { %459 = vmatprep.mubr.f32.mxu1 %v2551_v10  ;;  %743 = vmatpush1.bf16.msra.mxu0 %v2125_v49 }
  0xc9   :  { %744 = vmatprep.subr.bf16.mxu0 %v2134_v54 }
  0xcb   :  { %1705 = vmatmul.mubr.msk.f32.gmra.mxu1 %vm221_vm0, %v188_v27 }
  0xcc   :  { %465 = vmatprep.mubr.f32.mxu1 %v2551_v10  ;;  %745 = vmatpush1.bf16.msra.mxu0 %v2153_v4 }
  0xcd   :  { %746 = vmatprep.subr.bf16.mxu0 %v2160_v6 }
  0xcf   :  { %1706 = vmatmul.mubr.msk.f32.gmra.mxu1 %vm221_vm0, %v2146_v63 }
  0xd0   :  { %684 = vmatprep.mubr.bf16.mxu1 %v2553_v0  ;;  %747 = vmatpush1.bf16.msra.mxu0 %v2184_v22 }
  0xd1   :  { %861 = vmatprep.subr.bf16.mxu0 %v2083_v13 }
  0xd3   :  { %685 = vmatmul.mubr.bf16.vlgmr.msra.gmra.mxu1 %v2553_v0 }
  0xd4   :  { %782 = vmatpush1.bf16.msra.mxu1 %v2178_v21  ;;  %805 = vmatprep.mubr.bf16.mxu1 %v2553_v0 }
  0xd5   :  { %783 = vmatprep.subr.bf16.mxu1 %v2189_v23 }
  0xd8   :  { %784 = vmatpush1.bf16.msra.mxu1 %v2203_v33 }
  0xd9   :  { %785 = vmatprep.subr.bf16.mxu1 %v2210_v20 }
  0xdc   :  { %786 = vmatpush1.bf16.msra.mxu1 %v2222_v37 }
  0xdd   :  { %787 = vmatprep.subr.bf16.mxu1 %v2229_v38 }
  0xe0   :  { %788 = vmatpush1.bf16.msra.mxu1 %v2240_v41 }
  0xe1   :  { %902 = vmatprep.subr.bf16.mxu1 %v2170_v15 }
 0x166   :  { %v312_v47 = vpop.f32.mrf.mxu0 }
 0x168   :  { %v314_v50 = vpop.f32.mrf.mxu0 }
 0x16a   :  { %v318_v52 = vpop.f32.mrf.mxu0 }
 0x16b   :  { %v2278_v55 = vadd.f32 %v318_v52, %v204_v51 }
 0x16c   :  { %v320_v56 = vpop.f32.mrf.mxu0 }
 0x16d   :  { %v2280_v57 = vadd.f32 %v320_v56, %v208_v53 }
 0x16e   :  { %v324_v58 = vpop.f32.mrf.mxu0 }
 0x16f   :  { %v2282_v59 = vadd.f32 %v324_v58, %v204_v51  ;;  %v354_v60 = vpop.f32.mrf.mxu1  ;;  %v313_v58 = vadd.f32 %v312_v47, %v204_v51 }
 0x170   :  { %v2284_v61 = vadd.f32 %v354_v60, %v204_v51  ;;  %v326_v62 = vpop.f32.mrf.mxu0 }
 0x171   :  { %v2286_v63 = vadd.f32 %v326_v62, %v208_v53  ;;  %v356_v1 = vpop.f32.mrf.mxu1 }
 0x172   :  { %v2288_v2 = vadd.f32 %v356_v1, %v208_v53 }
 0x173   :  { %v330_v5 = vpop.f32.mrf.mxu0  ;;  %v425_v7 = vpop.f32.mrf.mxu1 }
 0x174   :  { %v2290_v8 = vadd.f32 %v330_v5, %v204_v51  ;;  %v315_v5 = vadd.f32 %v314_v50, %v208_v53 }
 0x175   :  { %v332_v11 = vpop.f32.mrf.mxu0  ;;  %v427_v12 = vpop.f32.mrf.mxu1 }
 0x176   :  { %v2292_v16 = vadd.f32 %v332_v11, %v208_v53 }
 0x177   :  { %v336_v17 = vpop.f32.mrf.mxu0  ;;  %v431_v18 = vpop.f32.mrf.mxu1 }
 0x178   :  { %v2294_v25 = vadd.f32 %v336_v17, %v204_v51  ;;  %v2296_v26 = vadd.f32 %v431_v18, %v212_v14 }
 0x179   :  { %v338_v28 = vpop.f32.mrf.mxu0  ;;  %v433_v29 = vpop.f32.mrf.mxu1 }
 0x17a   :  { %v2298_v30 = vadd.f32 %v338_v28, %v208_v53  ;;  %v2300_v31 = vadd.f32 %v433_v29, %v216_v24 }
 0x17b   :  { %v342_v32 = vpop.f32.mrf.mxu0  ;;  %v437_v34 = vpop.f32.mrf.mxu1 }
 0x17c   :  { %v2302_v19 = vadd.f32 %v342_v32, %v204_v51  ;;  %v2304_v35 = vadd.f32 %v437_v34, %v212_v14 }
 0x17d   :  { %v344_v36 = vpop.f32.mrf.mxu0  ;;  %v439_v40 = vpop.f32.mrf.mxu1 }
 0x17e   :  { %v2306_v27 = vadd.f32 %v344_v36, %v208_v53  ;;  %v2308_v42 = vadd.f32 %v439_v40, %v216_v24 }
 0x17f   :  { %v348_v43 = vpop.f32.mrf.mxu0  ;;  %v443_v45 = vpop.f32.mrf.mxu1 }
 0x180   :  { %v2310_v46 = vadd.f32 %v348_v43, %v204_v51  ;;  %v2312_v48 = vadd.f32 %v443_v45, %v212_v14 }
 0x181   :  { %v350_v52 = vpop.f32.mrf.mxu0  ;;  %v445_v56 = vpop.f32.mrf.mxu1 }
 0x182   :  { %v2314_v60 = vadd.f32 %v350_v52, %v208_v53  ;;  %v2316_v62 = vadd.f32 %v445_v56, %v216_v24 }
 0x183   :  { %v449_v1 = vpop.f32.mrf.mxu1  ;;  %v645_v3 = vpop.f32.mrf.mxu0 }
 0x184   :  { %v2318_v9 = vadd.f32 %v449_v1, %v212_v14  ;;  %v693_v11 = vadd.f32 %v645_v3, %v313_v58 }
 0x185   :  { %v451_v17 = vpop.f32.mrf.mxu1  ;;  %v647_v18 = vpop.f32.mrf.mxu0 }
 0x186   :  { %v1723_v28 = vmul.f32 -1.442695, %v693_v11  ;;  %v2320_v29 = vadd.f32 %v451_v17, %v216_v24  ;;  %v694_v32 = vadd.f32 %v647_v18, %v315_v5  ;;  %v426_v11 = vadd.f32 %v425_v7, %v212_v14 }
 0x187   :  { %v455_v34 = vpop.f32.mrf.mxu1  ;;  %v649_v36 = vpop.f32.mrf.mxu0  ;;  %v428_v18 = vadd.f32 %v427_v12, %v216_v24 }
 0x188   :  { %1834 = vpow2.f32 %v1723_v28  ;;  %v1724_v47 = vmul.f32 -1.442695, %v694_v32  ;;  %v2322_v51 = vadd.f32 %v455_v34, %v212_v14 }
 0x189   :  { %v457_v40 = vpop.f32.mrf.mxu1  ;;  %v650_v43 = vpop.f32.mrf.mxu0 }
 0x18a   :  { %1836 = vpow2.f32 %v1724_v47  ;;  %v2324_v45 = vadd.f32 %v457_v40, %v216_v24 }
 0x18b   :  { %v461_v50 = vpop.f32.mrf.mxu1 }
 0x18c   :  { %v2326_v53 = vadd.f32 %v461_v50, %v212_v14 }
 0x18d   :  { %v463_v52 = vpop.f32.mrf.mxu1 }
 0x18e   :  { %v2328_v56 = vadd.f32 %v463_v52, %v216_v24 }
 0x18f   :  { %v467_v58 = vpop.f32.mrf.mxu1 }
 0x190   :  { %v2330_v1 = vadd.f32 %v467_v58, %v212_v14 }
 0x191   :  { %v469_v3 = vpop.f32.mrf.mxu1 }
 0x192   :  { %v2332_v5 = vadd.f32 %v469_v3, %v216_v24 }
 0x193   :  { %v686_v17 = vpop.f32.mrf.mxu1 }
 0x194   :  { %v695_v32 = vadd.f32 %v686_v17, %v426_v11 }
 0x195   :  { %v1835_v28 = vpop.eup %1834  ;;  %v688_v34 = vpop.f32.mrf.mxu1 }
 0x196   :  { %v700_v36 = vadd.f32 1.0, %v1835_v28  ;;  %v696_v47 = vadd.f32 %v688_v34, %v428_v18 }
 0x197   :  { %v1837_v40 = vpop.eup %1836  ;;  %v690_v43 = vpop.f32.mrf.mxu1 }
 0x198   :  { %1838 = vrcp.f32 %v700_v36  ;;  %v706_v50 = vadd.f32 1.0, %v1837_v40  ;;  %v1725_v52 = vmul.f32 -1.442695, %v696_v47 }
 0x199   :  { %1840 = vtanh.f32 %v695_v32  ;;  %v691_v10 = vpop.f32.mrf.mxu1 }
 0x19a   :  { %1842 = vrcp.f32 %v706_v50 }
 0x19b   :  { %1844 = vpow2.f32 %v1725_v52 }
 0x1a5   :  { %v1839_v58 = vpop.eup %1838 }
 0x1a6   :  { %v1841_v3 = vpop.eup %1840 }
 0x1a7   :  { %v1843_v0 = vpop.eup %1842  ;;  %v717_v12 = vmul.f32 %v1841_v3, %v1839_v58 }
 0x1a8   :  { %v1845_v7 = vpop.eup %1844  ;;  %v716_v14 = vmul.f32 0.0, %v1843_v0  ;;  %v2555_v0 = vmov 0  }
 0x1a9   :  { %v713_v24 = vadd.f32 1.0, %v1845_v7 }
 0x1aa   :  { %v718_v11 = vadd.f32 %v717_v12, %v716_v14 }
 0x1ab   :  { %1846 = vrcp.f32 %v713_v24 }
 0x1ac   :  { %1848 = vtanh.f32 %v718_v11 }
 0x1b8   :  { %v1847_v17 = vpop.eup %1846 }
 0x1b9   :  { %v1849_v18 = vpop.eup %1848 }
 0x1ba   :  { %v720_v28 = vmul.f32 %v1849_v18, %v1847_v17 }
 0x1bc   :  { %v728_v34 = vpack.c.bf16 %v720_v28, %v720_v28 }
 0x1be   :  { %1726 = vmatmul.mubr.msk.bf16.vlgmr.msra.gmra.mxu0 %vm607_vm1, %v728_v34  ;;  %1727 = vmatmul.mubr.msk.bf16.vlgmr.msra.gmra.mxu1 %vm607_vm1, %v728_v34 }
 0x1bf   :  { %862 = vmatpush1.bf16.msra.mxu0 %v2109_v39  ;;  %903 = vmatpush1.bf16.msra.mxu1 %v2178_v21 }
 0x1c0   :  { %863 = vmatprep.subr.bf16.mxu0 %v2115_v44  ;;  %904 = vmatprep.subr.bf16.mxu1 %v2189_v23 }
 0x1c1   :  { %885 = vmatprep.mubr.bf16.mxu0 %v2555_v0  ;;  %926 = vmatprep.mubr.bf16.mxu1 %v2555_v0 }
 0x1c3   :  { %864 = vmatpush1.bf16.msra.mxu0 %v2125_v49  ;;  %905 = vmatpush1.bf16.msra.mxu1 %v2203_v33 }
 0x1c4   :  { %865 = vmatprep.subr.bf16.mxu0 %v2134_v54  ;;  %906 = vmatprep.subr.bf16.mxu1 %v2210_v20 }
 0x1c7   :  { %866 = vmatpush1.bf16.msra.mxu0 %v2153_v4  ;;  %907 = vmatpush1.bf16.msra.mxu1 %v2222_v37 }
 0x1c8   :  { %867 = vmatprep.subr.bf16.mxu0 %v2160_v6  ;;  %908 = vmatprep.subr.bf16.mxu1 %v2229_v38 }
 0x1cb   :  { %868 = vmatpush1.bf16.msra.mxu0 %v2184_v22  ;;  %909 = vmatpush1.bf16.msra.mxu1 %v2240_v41 }
 0x1cc   :  { %982 = vmatprep.subr.bf16.mxu0 %v2083_v13  ;;  %1023 = vmatprep.subr.bf16.mxu1 %v2170_v15 }
 0x27e   :  { %v766_v10 = vpop.f32.mrf.mxu0  ;;  %v807_v32 = vpop.f32.mrf.mxu1 }
 0x27f   :  { %v814_v36 = vadd.f32 %v766_v10, %v2278_v55  ;;  %v816_v24 = vadd.f32 %v807_v32, %v2296_v26 }
 0x280   :  { %v768_v47 = vpop.f32.mrf.mxu0  ;;  %v809_v40 = vpop.f32.mrf.mxu1 }
 0x281   :  { %v1728_v43 = vmul.f32 -1.442695, %v814_v36  ;;  %v815_v50 = vadd.f32 %v768_v47, %v2280_v57  ;;  %v817_v12 = vadd.f32 %v809_v40, %v2300_v31 }
 0x282   :  { %v770_v52 = vpop.f32.mrf.mxu0  ;;  %v811_v58 = vpop.f32.mrf.mxu1 }
 0x283   :  { %1850 = vpow2.f32 %v1728_v43  ;;  %v1729_v3 = vmul.f32 -1.442695, %v815_v50  ;;  %v1730_v17 = vmul.f32 -1.442695, %v817_v12 }
 0x284   :  { %v771_v7 = vpop.f32.mrf.mxu0  ;;  %v812_v14 = vpop.f32.mrf.mxu1 }
 0x285   :  { %1852 = vpow2.f32 %v1729_v3 }
 0x286   :  { %1854 = vtanh.f32 %v816_v24 }
 0x287   :  { %1856 = vpow2.f32 %v1730_v17 }
 0x290   :  { %v1851_v18 = vpop.eup %1850 }
 0x291   :  { %v821_v28 = vadd.f32 1.0, %v1851_v18 }
 0x292   :  { %v1853_v55 = vpop.eup %1852 }
 0x293   :  { %1858 = vrcp.f32 %v821_v28  ;;  %v827_v34 = vadd.f32 1.0, %v1853_v55  ;;  %v1855_v57 = vpop.eup %1854 }
 0x294   :  { %v1857_v10 = vpop.eup %1856 }
 0x295   :  { %1860 = vrcp.f32 %v827_v34  ;;  %v834_v50 = vadd.f32 1.0, %v1857_v10 }
 0x297   :  { %1862 = vrcp.f32 %v834_v50 }
 0x2a0   :  { %v1859_v36 = vpop.eup %1858 }
 0x2a1   :  { %v838_v47 = vmul.f32 %v1859_v36, %v1855_v57 }
 0x2a2   :  { %v1861_v43 = vpop.eup %1860 }
 0x2a3   :  { %v837_v52 = vmul.f32 %v1861_v43, %v718_v11 }
 0x2a4   :  { %v1863_v26 = vpop.eup %1862 }
 0x2a5   :  { %v839_v58 = vadd.f32 %v838_v47, %v837_v52 }
 0x2a7   :  { %1864 = vtanh.f32 %v839_v58 }
 0x2b4   :  { %v1865_v31 = vpop.eup %1864 }
 0x2b5   :  { %v841_v32 = vmul.f32 %v1865_v31, %v1863_v26 }
 0x2b7   :  { %v849_v40 = vpack.c.bf16 %v841_v32, %v841_v32 }
 0x2b9   :  { %1731 = vmatmul.mubr.msk.bf16.vlgmr.msra.gmra.mxu0 %vm607_vm1, %v849_v40  ;;  %1732 = vmatmul.mubr.msk.bf16.vlgmr.msra.gmra.mxu1 %vm607_vm1, %v849_v40 }
 0x2ba   :  { %983 = vmatpush1.bf16.msra.mxu0 %v2109_v39  ;;  %1024 = vmatpush1.bf16.msra.mxu1 %v2178_v21 }
 0x2bb   :  { %984 = vmatprep.subr.bf16.mxu0 %v2115_v44  ;;  %1025 = vmatprep.subr.bf16.mxu1 %v2189_v23 }
 0x2bc   :  { %1006 = vmatprep.mubr.bf16.mxu0 %v2555_v0  ;;  %1047 = vmatprep.mubr.bf16.mxu1 %v2555_v0 }
 0x2be   :  { %985 = vmatpush1.bf16.msra.mxu0 %v2125_v49  ;;  %1026 = vmatpush1.bf16.msra.mxu1 %v2203_v33 }
 0x2bf   :  { %986 = vmatprep.subr.bf16.mxu0 %v2134_v54  ;;  %1027 = vmatprep.subr.bf16.mxu1 %v2210_v20 }
 0x2c2   :  { %987 = vmatpush1.bf16.msra.mxu0 %v2153_v4  ;;  %1028 = vmatpush1.bf16.msra.mxu1 %v2222_v37 }
 0x2c3   :  { %988 = vmatprep.subr.bf16.mxu0 %v2160_v6  ;;  %1029 = vmatprep.subr.bf16.mxu1 %v2229_v38 }
 0x2c6   :  { %989 = vmatpush1.bf16.msra.mxu0 %v2184_v22  ;;  %1030 = vmatpush1.bf16.msra.mxu1 %v2240_v41 }
 0x2c7   :  { %1103 = vmatprep.subr.bf16.mxu0 %v2083_v13  ;;  %1144 = vmatprep.subr.bf16.mxu1 %v2170_v15 }
 0x379   :  { %v887_v11 = vpop.f32.mrf.mxu0  ;;  %v928_v3 = vpop.f32.mrf.mxu1 }
 0x37a   :  { %v935_v7 = vadd.f32 %v887_v11, %v2282_v59  ;;  %v937_v36 = vadd.f32 %v928_v3, %v2304_v35 }
 0x37b   :  { %v889_v14 = vpop.f32.mrf.mxu0  ;;  %v930_v12 = vpop.f32.mrf.mxu1 }
 0x37c   :  { %v1733_v24 = vmul.f32 -1.442695, %v935_v7  ;;  %v936_v17 = vadd.f32 %v889_v14, %v2286_v63  ;;  %v938_v10 = vadd.f32 %v930_v12, %v2308_v42 }
 0x37d   :  { %v891_v18 = vpop.f32.mrf.mxu0  ;;  %v932_v28 = vpop.f32.mrf.mxu1 }
 0x37e   :  { %1866 = vpow2.f32 %v1733_v24  ;;  %v1734_v55 = vmul.f32 -1.442695, %v936_v17  ;;  %v1735_v47 = vmul.f32 -1.442695, %v938_v10 }
 0x37f   :  { %v892_v34 = vpop.f32.mrf.mxu0  ;;  %v933_v57 = vpop.f32.mrf.mxu1 }
 0x380   :  { %1868 = vpow2.f32 %v1734_v55 }
 0x381   :  { %1870 = vtanh.f32 %v937_v36 }
 0x382   :  { %1872 = vpow2.f32 %v1735_v47 }
 0x38b   :  { %v1867_v43 = vpop.eup %1866 }
 0x38c   :  { %v942_v50 = vadd.f32 1.0, %v1867_v43 }
 0x38d   :  { %v1869_v59 = vpop.eup %1868 }
 0x38e   :  { %1874 = vrcp.f32 %v942_v50  ;;  %v948_v52 = vadd.f32 1.0, %v1869_v59  ;;  %v1871_v63 = vpop.eup %1870 }
 0x38f   :  { %v1873_v26 = vpop.eup %1872 }
 0x390   :  { %1876 = vrcp.f32 %v948_v52  ;;  %v955_v11 = vadd.f32 1.0, %v1873_v26 }
 0x392   :  { %1878 = vrcp.f32 %v955_v11 }
 0x39b   :  { %v1875_v31 = vpop.eup %1874 }
 0x39c   :  { %v959_v32 = vmul.f32 %v1875_v31, %v1871_v63 }
 0x39d   :  { %v1877_v40 = vpop.eup %1876 }
 0x39e   :  { %v958_v7 = vmul.f32 %v1877_v40, %v839_v58 }
 0x39f   :  { %v1879_v35 = vpop.eup %1878 }
 0x3a0   :  { %v960_v14 = vadd.f32 %v959_v32, %v958_v7 }
 0x3a2   :  { %1880 = vtanh.f32 %v960_v14 }
 0x3af   :  { %v1881_v42 = vpop.eup %1880 }
 0x3b0   :  { %v962_v3 = vmul.f32 %v1881_v42, %v1879_v35 }
 0x3b2   :  { %v970_v12 = vpack.c.bf16 %v962_v3, %v962_v3 }
 0x3b4   :  { %1736 = vmatmul.mubr.msk.bf16.vlgmr.msra.gmra.mxu0 %vm607_vm1, %v970_v12  ;;  %1737 = vmatmul.mubr.msk.bf16.vlgmr.msra.gmra.mxu1 %vm607_vm1, %v970_v12 }
 0x3b5   :  { %1104 = vmatpush1.bf16.msra.mxu0 %v2109_v39  ;;  %1145 = vmatpush1.bf16.msra.mxu1 %v2178_v21 }
 0x3b6   :  { %1105 = vmatprep.subr.bf16.mxu0 %v2115_v44  ;;  %1146 = vmatprep.subr.bf16.mxu1 %v2189_v23 }
 0x3b7   :  { %1127 = vmatprep.mubr.bf16.mxu0 %v2555_v0  ;;  %1168 = vmatprep.mubr.bf16.mxu1 %v2555_v0 }
 0x3b9   :  { %1106 = vmatpush1.bf16.msra.mxu0 %v2125_v49  ;;  %1147 = vmatpush1.bf16.msra.mxu1 %v2203_v33 }
 0x3ba   :  { %1107 = vmatprep.subr.bf16.mxu0 %v2134_v54  ;;  %1148 = vmatprep.subr.bf16.mxu1 %v2210_v20 }
 0x3bd   :  { %1108 = vmatpush1.bf16.msra.mxu0 %v2153_v4  ;;  %1149 = vmatpush1.bf16.msra.mxu1 %v2222_v37 }
 0x3be   :  { %1109 = vmatprep.subr.bf16.mxu0 %v2160_v6  ;;  %1150 = vmatprep.subr.bf16.mxu1 %v2229_v38 }
 0x3c1   :  { %1110 = vmatpush1.bf16.msra.mxu0 %v2184_v22  ;;  %1151 = vmatpush1.bf16.msra.mxu1 %v2240_v41 }
 0x3c2   :  { %1224 = vmatprep.subr.bf16.mxu0 %v2083_v13  ;;  %1265 = vmatprep.subr.bf16.mxu1 %v2170_v15 }
 0x474   :  { %v1008_v58 = vpop.f32.mrf.mxu0  ;;  %v1049_v24 = vpop.f32.mrf.mxu1 }
 0x475   :  { %v1056_v17 = vadd.f32 %v1008_v58, %v2290_v8  ;;  %v1058_v59 = vadd.f32 %v1049_v24, %v2312_v48 }
 0x476   :  { %v1010_v18 = vpop.f32.mrf.mxu0  ;;  %v1051_v28 = vpop.f32.mrf.mxu1 }
 0x477   :  { %v1738_v55 = vmul.f32 -1.442695, %v1056_v17  ;;  %v1057_v34 = vadd.f32 %v1010_v18, %v2292_v16  ;;  %v1059_v50 = vadd.f32 %v1051_v28, %v2316_v62 }
 0x478   :  { %v1012_v57 = vpop.f32.mrf.mxu0  ;;  %v1053_v10 = vpop.f32.mrf.mxu1 }
 0x479   :  { %1882 = vpow2.f32 %v1738_v55  ;;  %v1739_v36 = vmul.f32 -1.442695, %v1057_v34  ;;  %v1740_v52 = vmul.f32 -1.442695, %v1059_v50 }
 0x47a   :  { %v1013_v47 = vpop.f32.mrf.mxu0  ;;  %v1054_v43 = vpop.f32.mrf.mxu1 }
 0x47b   :  { %1884 = vpow2.f32 %v1739_v36 }
 0x47c   :  { %1886 = vtanh.f32 %v1058_v59 }
 0x47d   :  { %1888 = vpow2.f32 %v1740_v52 }
 0x486   :  { %v1883_v63 = vpop.eup %1882 }
 0x487   :  { %v1063_v26 = vadd.f32 1.0, %v1883_v63 }
 0x488   :  { %v1885_v8 = vpop.eup %1884 }
 0x489   :  { %1890 = vrcp.f32 %v1063_v26  ;;  %v1069_v31 = vadd.f32 1.0, %v1885_v8  ;;  %v1887_v16 = vpop.eup %1886 }
 0x48a   :  { %v1889_v32 = vpop.eup %1888 }
 0x48b   :  { %1892 = vrcp.f32 %v1069_v31  ;;  %v1076_v35 = vadd.f32 1.0, %v1889_v32 }
 0x48d   :  { %1894 = vrcp.f32 %v1076_v35 }
 0x496   :  { %v1891_v40 = vpop.eup %1890 }
 0x497   :  { %v1080_v11 = vmul.f32 %v1891_v40, %v1887_v16 }
 0x498   :  { %v1893_v7 = vpop.eup %1892 }
 0x499   :  { %v1079_v42 = vmul.f32 %v1893_v7, %v960_v14 }
 0x49a   :  { %v1895_v48 = vpop.eup %1894 }
 0x49b   :  { %v1081_v3 = vadd.f32 %v1080_v11, %v1079_v42 }
 0x49d   :  { %1896 = vtanh.f32 %v1081_v3 }
 0x4aa   :  { %v1897_v62 = vpop.eup %1896 }
 0x4ab   :  { %v1083_v12 = vmul.f32 %v1897_v62, %v1895_v48 }
 0x4ad   :  { %v1091_v58 = vpack.c.bf16 %v1083_v12, %v1083_v12 }
 0x4af   :  { %1741 = vmatmul.mubr.msk.bf16.vlgmr.msra.gmra.mxu0 %vm607_vm1, %v1091_v58  ;;  %1742 = vmatmul.mubr.msk.bf16.vlgmr.msra.gmra.mxu1 %vm607_vm1, %v1091_v58 }
 0x4b0   :  { %1225 = vmatpush1.bf16.msra.mxu0 %v2109_v39  ;;  %1266 = vmatpush1.bf16.msra.mxu1 %v2178_v21 }
 0x4b1   :  { %1226 = vmatprep.subr.bf16.mxu0 %v2115_v44  ;;  %1267 = vmatprep.subr.bf16.mxu1 %v2189_v23 }
 0x4b2   :  { %1248 = vmatprep.mubr.bf16.mxu0 %v2555_v0  ;;  %1289 = vmatprep.mubr.bf16.mxu1 %v2555_v0 }
 0x4b4   :  { %1227 = vmatpush1.bf16.msra.mxu0 %v2125_v49  ;;  %1268 = vmatpush1.bf16.msra.mxu1 %v2203_v33 }
 0x4b5   :  { %1228 = vmatprep.subr.bf16.mxu0 %v2134_v54  ;;  %1269 = vmatprep.subr.bf16.mxu1 %v2210_v20 }
 0x4b8   :  { %1229 = vmatpush1.bf16.msra.mxu0 %v2153_v4  ;;  %1270 = vmatpush1.bf16.msra.mxu1 %v2222_v37 }
 0x4b9   :  { %1230 = vmatprep.subr.bf16.mxu0 %v2160_v6  ;;  %1271 = vmatprep.subr.bf16.mxu1 %v2229_v38 }
 0x4bc   :  { %1231 = vmatpush1.bf16.msra.mxu0 %v2184_v22  ;;  %1272 = vmatpush1.bf16.msra.mxu1 %v2240_v41 }
 0x4bd   :  { %1345 = vmatprep.subr.bf16.mxu0 %v2083_v13  ;;  %1386 = vmatprep.subr.bf16.mxu1 %v2170_v15 }
 0x56f   :  { %v1129_v14 = vpop.f32.mrf.mxu0  ;;  %v1170_v24 = vpop.f32.mrf.mxu1 }
 0x570   :  { %v1177_v17 = vadd.f32 %v1129_v14, %v2294_v25  ;;  %v1179_v50 = vadd.f32 %v1170_v24, %v2318_v9 }
 0x571   :  { %v1131_v18 = vpop.f32.mrf.mxu0  ;;  %v1172_v28 = vpop.f32.mrf.mxu1 }
 0x572   :  { %v1743_v55 = vmul.f32 -1.442695, %v1177_v17  ;;  %v1178_v34 = vadd.f32 %v1131_v18, %v2298_v30  ;;  %v1180_v13 = vadd.f32 %v1172_v28, %v2320_v29 }
 0x573   :  { %v1133_v57 = vpop.f32.mrf.mxu0  ;;  %v1174_v10 = vpop.f32.mrf.mxu1 }
 0x574   :  { %1898 = vpow2.f32 %v1743_v55  ;;  %v1744_v36 = vmul.f32 -1.442695, %v1178_v34  ;;  %v1745_v59 = vmul.f32 -1.442695, %v1180_v13 }
 0x575   :  { %v1134_v47 = vpop.f32.mrf.mxu0  ;;  %v1175_v43 = vpop.f32.mrf.mxu1 }
 0x576   :  { %1900 = vpow2.f32 %v1744_v36 }
 0x577   :  { %1902 = vtanh.f32 %v1179_v50 }
 0x578   :  { %1904 = vpow2.f32 %v1745_v59 }
 0x581   :  { %v1899_v52 = vpop.eup %1898 }
 0x582   :  { %v1184_v63 = vadd.f32 1.0, %v1899_v52 }
 0x583   :  { %v1901_v25 = vpop.eup %1900 }
 0x584   :  { %1906 = vrcp.f32 %v1184_v63  ;;  %v1190_v26 = vadd.f32 1.0, %v1901_v25  ;;  %v1903_v30 = vpop.eup %1902  ;;  %v1963_v63 = vld [vmem:[%s2548_s3 + $0x60] ss:$16 sps:$4 sm:$0xff]   ;;  %v1964_v25 = vld [vmem:[%s2548_s3 + $0x44] ss:$16 sps:$4 sm:$0xff]  }
 0x585   :  { %v1905_v8 = vpop.eup %1904 }
 0x586   :  { %1908 = vrcp.f32 %v1190_v26  ;;  %v1197_v40 = vadd.f32 1.0, %v1905_v8  ;;  %v1965_v26 = vld [vmem:[%s2548_s3 + $0x40] ss:$16 sps:$4 sm:$0xff]  }
 0x588   :  { %1910 = vrcp.f32 %v1197_v40 }
 0x591   :  { %v1907_v31 = vpop.eup %1906 }
 0x592   :  { %v1201_v16 = vmul.f32 %v1907_v31, %v1903_v30 }
 0x593   :  { %v1909_v32 = vpop.eup %1908 }
 0x594   :  { %v1200_v11 = vmul.f32 %v1909_v32, %v1081_v3 }
 0x595   :  { %v1911_v9 = vpop.eup %1910 }
 0x596   :  { %v1202_v7 = vadd.f32 %v1201_v16, %v1200_v11 }
 0x598   :  { %1912 = vtanh.f32 %v1202_v7 }
 0x5a5   :  { %v1913_v29 = vpop.eup %1912 }
 0x5a6   :  { %v1204_v35 = vmul.f32 %v1913_v29, %v1911_v9 }
 0x5a8   :  { %v1212_v42 = vpack.c.bf16 %v1204_v35, %v1204_v35 }
 0x5aa   :  { %1746 = vmatmul.mubr.msk.bf16.vlgmr.msra.gmra.mxu0 %vm607_vm1, %v1212_v42  ;;  %1747 = vmatmul.mubr.msk.bf16.vlgmr.msra.gmra.mxu1 %vm607_vm1, %v1212_v42 }
 0x5ab   :  { %1346 = vmatpush1.bf16.msra.mxu0 %v2109_v39  ;;  %1387 = vmatpush1.bf16.msra.mxu1 %v2178_v21  ;;  %v1962_v39 = vld [vmem:[%s2548_s3 + $0x64] ss:$16 sps:$4 sm:$0xff]  }
 0x5ac   :  { %1347 = vmatprep.subr.bf16.mxu0 %v2115_v44  ;;  %1388 = vmatprep.subr.bf16.mxu1 %v2189_v23 }
 0x5ad   :  { %1369 = vmatprep.mubr.bf16.mxu0 %v2555_v0  ;;  %1410 = vmatprep.mubr.bf16.mxu1 %v2555_v0 }
 0x5af   :  { %1348 = vmatpush1.bf16.msra.mxu0 %v2125_v49  ;;  %1389 = vmatpush1.bf16.msra.mxu1 %v2203_v33 }
 0x5b0   :  { %1349 = vmatprep.subr.bf16.mxu0 %v2134_v54  ;;  %1390 = vmatprep.subr.bf16.mxu1 %v2210_v20 }
 0x5b3   :  { %1350 = vmatpush1.bf16.msra.mxu0 %v2153_v4  ;;  %1391 = vmatpush1.bf16.msra.mxu1 %v2222_v37 }
 0x5b4   :  { %1351 = vmatprep.subr.bf16.mxu0 %v2160_v6  ;;  %1392 = vmatprep.subr.bf16.mxu1 %v2229_v38 }
 0x5b7   :  { %1352 = vmatpush1.bf16.msra.mxu0 %v2184_v22  ;;  %1393 = vmatpush1.bf16.msra.mxu1 %v2240_v41 }
 0x5b8   :  { %1466 = vmatprep.subr.bf16.mxu0 %v1962_v39  ;;  %1507 = vmatprep.subr.bf16.mxu1 %v2170_v15 }
 0x66a   :  { %v1250_v44 = vpop.f32.mrf.mxu0  ;;  %v1291_v49 = vpop.f32.mrf.mxu1 }
 0x66b   :  { %v1298_v54 = vadd.f32 %v1250_v44, %v2302_v19  ;;  %v1300_v15 = vadd.f32 %v1291_v49, %v2322_v51 }
 0x66c   :  { %v1252_v4 = vpop.f32.mrf.mxu0  ;;  %v1293_v3 = vpop.f32.mrf.mxu1 }
 0x66d   :  { %v1748_v6 = vmul.f32 -1.442695, %v1298_v54  ;;  %v1299_v48 = vadd.f32 %v1252_v4, %v2306_v27  ;;  %v1301_v17 = vadd.f32 %v1293_v3, %v2324_v45 }
 0x66e   :  { %v1254_v62 = vpop.f32.mrf.mxu0  ;;  %v1295_v12 = vpop.f32.mrf.mxu1 }
 0x66f   :  { %1914 = vpow2.f32 %v1748_v6  ;;  %v1749_v58 = vmul.f32 -1.442695, %v1299_v48  ;;  %v1750_v18 = vmul.f32 -1.442695, %v1301_v17  ;;  %v1572_v17 = vld [vmem:[%s2549_s4 + $0x20] sm:$0xff] }
 0x670   :  { %v1255_v14 = vpop.f32.mrf.mxu0  ;;  %v1296_v24 = vpop.f32.mrf.mxu1 }
 0x671   :  { %1916 = vpow2.f32 %v1749_v58  ;;  %v1575_v58 = vld [vmem:[%s2549_s4 + $0x38] sm:$0xff]  ;;  %v1574_v14 = vld [vmem:[%s2549_s4 + $0x30] sm:$0xff]  ;;  %v1573_v24 = vld [vmem:[%s2549_s4 + $0x28] sm:$0xff] }
 0x672   :  { %1918 = vtanh.f32 %v1300_v15  ;;  %v1571_v15 = vld [vmem:[%s2549_s4 + $0x18] sm:$0xff] }
 0x673   :  { %1920 = vpow2.f32 %v1750_v18  ;;  %v1570_v18 = vld [vmem:[%s2549_s4 + $0x10] sm:$0xff] }
 0x67c   :  { %v1915_v28 = vpop.eup %1914 }
 0x67d   :  { %v1305_v55 = vadd.f32 1.0, %v1915_v28  ;;  %v1569_v28 = vld [vmem:[%s2549_s4 + $0x8] sm:$0xff] }
 0x67e   :  { %v1917_v19 = vpop.eup %1916 }
 0x67f   :  { %1922 = vrcp.f32 %v1305_v55  ;;  %v1311_v34 = vadd.f32 1.0, %v1917_v19  ;;  %v1919_v27 = vpop.eup %1918  ;;  %v1568_v55 = vld [vmem:[%s2549_s4] sm:$0xff] }
 0x680   :  { %v1921_v57 = vpop.eup %1920 }
 0x681   :  { %1924 = vrcp.f32 %v1311_v34  ;;  %v1318_v43 = vadd.f32 1.0, %v1921_v57 }
 0x683   :  { %1926 = vrcp.f32 %v1318_v43 }
 0x68c   :  { %v1923_v10 = vpop.eup %1922 }
 0x68d   :  { %v1322_v36 = vmul.f32 %v1923_v10, %v1919_v27 }
 0x68e   :  { %v1925_v47 = vpop.eup %1924 }
 0x68f   :  { %v1321_v13 = vmul.f32 %v1925_v47, %v1202_v7 }
 0x690   :  { %v1927_v51 = vpop.eup %1926 }
 0x691   :  { %v2456_v50 = vadd.f32 %v1322_v36, %v1321_v13 }
 0x693   :  { %1928 = vtanh.f32 %v2456_v50 }
 0x6a0   :  { %v1929_v45 = vpop.eup %1928 }
 0x6a1   :  { %v1325_v59 = vmul.f32 %v1929_v45, %v1927_v51 }
 0x6a3   :  { %v1333_v52 = vpack.c.bf16 %v1325_v59, %v1325_v59 }
 0x6a5   :  { %1751 = vmatmul.mubr.msk.bf16.vlgmr.msra.gmra.mxu0 %vm607_vm1, %v1333_v52  ;;  %1752 = vmatmul.mubr.msk.bf16.vlgmr.msra.gmra.mxu1 %vm607_vm1, %v1333_v52 }
 0x6a6   :  { %1467 = vmatpush1.bf16.msra.mxu0 %v1963_v63  ;;  %1508 = vmatpush1.bf16.msra.mxu1 %v2178_v21  ;;  %v1966_v21 = vld [vmem:[%s2548_s3 + $0x24] ss:$16 sps:$4 sm:$0xff]  }
 0x6a7   :  { %1468 = vmatprep.subr.bf16.mxu0 %v1964_v25  ;;  %1509 = vmatprep.subr.bf16.mxu1 %v2189_v23  ;;  %v1967_v23 = vld [vmem:[%s2548_s3 + $0x20] ss:$16 sps:$4 sm:$0xff]  }
 0x6a8   :  { %1490 = vmatprep.mubr.bf16.mxu0 %v2555_v0  ;;  %1531 = vmatprep.mubr.bf16.mxu1 %v2555_v0  ;;  %v1968_v0 = vld [vmem:[%s2548_s3 + $0x4] ss:$16 sps:$4 sm:$0xff]  }
 0x6aa   :  { %1469 = vmatpush1.bf16.msra.mxu0 %v1965_v26  ;;  %1510 = vmatpush1.bf16.msra.mxu1 %v2203_v33  ;;  %v2556_v33 = vmov 0.0  }
 0x6ab   :  { %1470 = vmatprep.subr.bf16.mxu0 %v1966_v21  ;;  %1511 = vmatprep.subr.bf16.mxu1 %v2210_v20 }
 0x6ae   :  { %1471 = vmatpush1.bf16.msra.mxu0 %v1967_v23  ;;  %1512 = vmatpush1.bf16.msra.mxu1 %v2222_v37 }
 0x6af   :  { %1472 = vmatprep.subr.bf16.mxu0 %v1968_v0  ;;  %1513 = vmatprep.subr.bf16.mxu1 %v2229_v38 }
 0x6b2   :  { %1473 = vmatpush1.bf16.msra.mxu0 %v2184_v22  ;;  %1514 = vmatpush1.bf16.msra.mxu1 %v2240_v41 }
 0x6b3   :  { %1774 = vmatprep.subr.mxu0 %v2556_v33 }
 0x765   :  { %v1371_v20 = vpop.f32.mrf.mxu0  ;;  %v1412_v30 = vpop.f32.mrf.mxu1 }
 0x766   :  { %v1419_v8 = vadd.f32 %v1371_v20, %v2310_v46  ;;  %v1421_v41 = vadd.f32 %v1412_v30, %v2326_v53 }
 0x767   :  { %v1373_v31 = vpop.f32.mrf.mxu0  ;;  %v1414_v16 = vpop.f32.mrf.mxu1 }
 0x768   :  { %v1753_v37 = vmul.f32 -1.442695, %v1419_v8  ;;  %v1420_v32 = vadd.f32 %v1373_v31, %v2314_v60  ;;  %v1422_v22 = vadd.f32 %v1414_v16, %v2328_v56 }
 0x769   :  { %v1375_v40 = vpop.f32.mrf.mxu0  ;;  %v1416_v11 = vpop.f32.mrf.mxu1 }
 0x76a   :  { %1930 = vpow2.f32 %v1753_v37  ;;  %v1754_v7 = vmul.f32 -1.442695, %v1420_v32  ;;  %v1755_v29 = vmul.f32 -1.442695, %v1422_v22  ;;  %v1761_v37 = vld [vmem:[#allocation3 + $0x14] ss:$0 sm:$0xff] }
 0x76b   :  { %v1376_v38 = vpop.f32.mrf.mxu0  ;;  %v1417_v9 = vpop.f32.mrf.mxu1 }
 0x76c   :  { %1932 = vpow2.f32 %v1754_v7  ;;  %v1763_v38 = vld [vmem:[%s2549_s4 + $0x40] ss:$0 sm:$0xff] }
 0x76d   :  { %1934 = vtanh.f32 %v1421_v41 }
 0x76e   :  { %1936 = vpow2.f32 %v1755_v29  ;;  %v1764_v29 = vld [vmem:[#allocation3 + $0x18] ss:$0 sm:$0xff] }
 0x777   :  { %v1931_v35 = vpop.eup %1930 }
 0x778   :  { %v1426_v42 = vadd.f32 1.0, %v1931_v35 }
 0x779   :  { %v1933_v46 = vpop.eup %1932 }
 0x77a   :  { %1938 = vrcp.f32 %v1426_v42  ;;  %v1432_v39 = vadd.f32 1.0, %v1933_v46  ;;  %v1935_v60 = vpop.eup %1934 }
 0x77b   :  { %v1937_v44 = vpop.eup %1936 }
 0x77c   :  { %1940 = vrcp.f32 %v1432_v39  ;;  %v1439_v3 = vadd.f32 1.0, %v1937_v44 }
 0x77e   :  { %1942 = vrcp.f32 %v1439_v3 }
 0x787   :  { %v1939_v49 = vpop.eup %1938 }
 0x788   :  { %v1443_v54 = vmul.f32 %v1939_v49, %v1935_v60 }
 0x789   :  { %v1941_v4 = vpop.eup %1940 }
 0x78a   :  { %v1442_v6 = vmul.f32 %v1941_v4, %v2456_v50 }
 0x78b   :  { %v1943_v53 = vpop.eup %1942 }
 0x78c   :  { %v2495_v56 = vadd.f32 %v1443_v54, %v1442_v6 }
 0x78e   :  { %1944 = vtanh.f32 %v2495_v56 }
 0x79b   :  { %v1945_v48 = vpop.eup %1944 }
 0x79c   :  { %v1446_v62 = vmul.f32 %v1945_v48, %v1943_v53 }
 0x79e   :  { %v1454_v12 = vpack.c.bf16 %v1446_v62, %v1446_v62 }
 0x7a0   :  { %1756 = vmatmul.mubr.msk.bf16.vlgmr.msra.gmra.mxu0 %vm607_vm1, %v1454_v12  ;;  %1757 = vmatmul.mubr.msk.bf16.vlgmr.msra.gmra.mxu1 %vm607_vm1, %v1454_v12 }
 0x7a1   :  { %1775 = vmatpush3.msra.mxu0 %v1575_v58  ;;  %1790 = vmatprep.mubr.msk.f32.mxu0 %vm2020_vm2, %v2556_v33 }
 0x7a2   :  { %1776 = vmatprep.subr.mxu0 %v2556_v33 }
 0x7a3   :  { %1777 = vmatpush3.msra.mxu0 %v1574_v14 }
 0x7a4   :  { %1778 = vmatprep.subr.mxu0 %v2556_v33 }
 0x7a5   :  { %1779 = vmatpush3.msra.mxu0 %v1573_v24 }
 0x7a6   :  { %1780 = vmatprep.subr.mxu0 %v2556_v33 }
 0x7a7   :  { %1781 = vmatpush3.msra.mxu0 %v1572_v17 }
 0x7a8   :  { %1782 = vmatprep.subr.mxu0 %v2556_v33 }
 0x7a9   :  { %1783 = vmatpush3.msra.mxu0 %v1571_v15 }
 0x7aa   :  { %1784 = vmatprep.subr.mxu0 %v2556_v33 }
 0x7ab   :  { %1785 = vmatpush3.msra.mxu0 %v1570_v18 }
 0x7ac   :  { %1786 = vmatprep.subr.mxu0 %v2556_v33 }
 0x7ad   :  { %1787 = vmatpush3.msra.mxu0 %v1569_v28 }
 0x7ae   :  { %1788 = vmatprep.subr.mxu0 %v2556_v33 }
 0x7af   :  { %1789 = vmatpush3.msra.mxu0 %v1568_v55 }
 0x860   :  { %v1492_v19 = vpop.f32.mrf.mxu0  ;;  %v1533_v34 = vpop.f32.mrf.mxu1 }
 0x861   :  { %v1540_v27 = vadd.f32 %v1492_v19, %v2284_v61  ;;  %v1542_v52 = vadd.f32 %v1533_v34, %v2330_v1 }
 0x862   :  { %v1494_v57 = vpop.f32.mrf.mxu0  ;;  %v1535_v10 = vpop.f32.mrf.mxu1 }
 0x863   :  { %v1758_v36 = vmul.f32 -1.442695, %v1540_v27  ;;  %v1541_v47 = vadd.f32 %v1494_v57, %v2288_v2  ;;  %v1543_v59 = vadd.f32 %v1535_v10, %v2332_v5 }
 0x864   :  { %v1496_v43 = vpop.f32.mrf.mxu0  ;;  %v1537_v13 = vpop.f32.mrf.mxu1 }
 0x865   :  { %1946 = vpow2.f32 %v1758_v36  ;;  %v1759_v50 = vmul.f32 -1.442695, %v1541_v47  ;;  %v1760_v63 = vmul.f32 -1.442695, %v1543_v59 }
 0x866   :  { %v1497_v51 = vpop.f32.mrf.mxu0  ;;  %v1538_v45 = vpop.f32.mrf.mxu1 }
 0x867   :  { %1948 = vpow2.f32 %v1759_v50 }
 0x868   :  { %1950 = vtanh.f32 %v1542_v52 }
 0x869   :  { %1952 = vpow2.f32 %v1760_v63 }
 0x872   :  { %v1947_v25 = vpop.eup %1946 }
 0x873   :  { %v1547_v26 = vadd.f32 1.0, %v1947_v25 }
 0x874   :  { %v1949_v61 = vpop.eup %1948 }
 0x875   :  { %1954 = vrcp.f32 %v1547_v26  ;;  %v1553_v21 = vadd.f32 1.0, %v1949_v61  ;;  %v1951_v2 = vpop.eup %1950 }
 0x876   :  { %v1953_v23 = vpop.eup %1952 }
 0x877   :  { %1956 = vrcp.f32 %v1553_v21  ;;  %v1560_v30 = vadd.f32 1.0, %v1953_v23 }
 0x879   :  { %1958 = vrcp.f32 %v1560_v30 }
 0x882   :  { %v1955_v0 = vpop.eup %1954 }
 0x883   :  { %v1564_v33 = vmul.f32 %v1955_v0, %v1951_v2 }
 0x884   :  { %v1957_v20 = vpop.eup %1956 }
 0x885   :  { %v1563_v8 = vmul.f32 %v1957_v20, %v2495_v56 }
 0x886   :  { %v1959_v1 = vpop.eup %1958 }
 0x887   :  { %v1565_v5 = vadd.f32 %v1564_v33, %v1563_v8 }
 0x889   :  { %1960 = vtanh.f32 %v1565_v5 }
 0x896   :  { %v1961_v31 = vpop.eup %1960 }
 0x897   :  { %v1567_v16 = vmul.f32 %v1961_v31, %v1959_v1 }
 0x899   :  { %1791 = vmatmul.mubr.msk.f32.vlgmr.msra.gmra.mxu0 %vm607_vm1, %v1567_v16 }
 0x959   :  { %v1652_v32 = vpop.f32.mrf.mxu0 }
 0x95a   :  { %v1653_v40 = vadd.f32 %v1761_v37, %v1652_v32 }
 0x95b   :  { %v1792_v11 = vpop.f32.mrf.mxu0 }
 0x95c   :  { %v1656_v7 = vmul.f32 0.01, %v1653_v40 }
 0x95e   :  { %v1657_v9 = vmax.f32 %v1653_v40, %v1656_v7 }
 0x960   :  { %v1662_v22 = vmul.f32 %v1763_v38, %v1657_v9 }
 0x962   :  { %v1663_v41 = vsel %vm607_vm1, %v1662_v22, 0.0 }
 0x963   :  { %1664 = vadd.xlane.f32.xlu1 %v1663_v41 }
 0x9ec   :  { %v1665_v35 = vpop.xlane.xlu1 %1664 }
 0x9ed   :  { %v1670_v42 = vadd.f32 %v1764_v29, %v1665_v35 }
 0x9ef   :  { %v1671_v46 = vmul.f32 0.01, %v1670_v42 }
 0x9f1   :  { %v1672_v39 = vmax.f32 %v1670_v42, %v1671_v46 }
 0x9f3   :  { %1674 = vst.msk [vmem:[%s2550_s5] sm:$0xff] %vm1673_vm3, %v1672_v39 }
 0x9f4   :  { %1679 = vsyncpa [#allocation4], 1 }
 0x9f5   :  { %1680 = vsyncpa [#allocation6], 1 }

</bundles_post_ra>
